<compile_context>
chip_gen: v7x
topology: tpu7x:2x2x1
jax: 0.10.0
libtpu: 0.0.40
codegen_flags: <defaults>
</compile_context>

<pallas_src>
import jax
import jax.numpy as jnp
from jax.experimental import pallas as pl
from jax.experimental.pallas import tpu as pltpu

# Small synthetic Whisper-like dimensions.
B, T, S, D = 2, 8, 16, 32        # batch, text ctx, audio ctx, n_state
H = 4                            # n_head
DH = D // H                      # head dim
N_MLP = 4 * D                    # mlp hidden
N_BLOCKS = 2                     # number of decoder blocks
SCALE = float(DH) ** -0.25       # whisper scales q and k each by (d_head)^-0.25
SCALE2 = SCALE * SCALE           # folded: one f32 multiply on q
LN_EPS = 1e-5

# Packed small-param row indices (pvec: (N_BLOCKS, 13, D) f32).
_LN0G, _LN0B, _LN1G, _LN1B, _LN2G, _LN2B = 0, 1, 2, 3, 4, 5
_ABQ, _ABV, _ABO = 6, 7, 8
_CBQ, _CBV, _CBO = 9, 10, 11
_B2 = 12


# --------------------------------------------------------------------------
# In-kernel helpers (traced inside the Pallas kernel body).
# --------------------------------------------------------------------------
def _layer_norm(h, g, b):
    # h: (T*, D) f32 ; g, b: (1, D) f32
    mu = jnp.mean(h, axis=-1, keepdims=True)
    c = h - mu
    var = jnp.mean(c * c, axis=-1, keepdims=True)
    return c * jax.lax.rsqrt(var + LN_EPS) * g + b


def _split_heads(z):
    # (T*, D) f32 -> (H, T*, DH) bf16 via static lane slices (compile-time unrolled
    # data plumbing only; all matmuls stay batched over the head axis).
    zb = z.astype(jnp.bfloat16)
    return jnp.stack([zb[:, h * DH:(h + 1) * DH] for h in range(H)], axis=0)


def _attn_core(q, k, v, w_o, b_o, mask):
    """Batched-over-heads attention core + single flat output projection.

    q:   (Tq, D) f32 (already scaled by SCALE^2)
    k,v: (Tk, D) f32
    w_o: (D, D) bf16      b_o: (1, D) f32
    mask: (Tq, Tk) additive or None
    """
    q3 = _split_heads(q)                       # (H, Tq, DH) bf16
    k3 = _split_heads(k)                       # (H, Tk, DH) bf16
    v3 = _split_heads(v)                       # (H, Tk, DH) bf16

    # Scores for all heads at once; DH is the only small contraction.
    s = jnp.einsum('hqd,hkd->hqk', q3, k3,
                   preferred_element_type=jnp.float32)          # (H, Tq, Tk) f32
    if mask is not None:
        s = s + mask[None]

    m = jnp.max(s, axis=-1, keepdims=True)
    e = jnp.exp(s - m)
    p = e * pl.reciprocal(jnp.sum(e, axis=-1, keepdims=True), approx=True)

    ctx = jnp.einsum('hqk,hkd->hqd', p.astype(jnp.bfloat16), v3,
                     preferred_element_type=jnp.float32)        # (H, Tq, DH) f32

    # Merge heads back to (Tq, D) and do ONE flat output projection.
    ctx2 = jnp.concatenate([ctx[h] for h in range(H)], axis=-1)  # (Tq, D) f32
    return jnp.dot(ctx2.astype(jnp.bfloat16), w_o,
                   preferred_element_type=jnp.float32) + b_o     # (Tq, D) f32


# --------------------------------------------------------------------------
# Fused decoder-stack kernel.
# grid = (B, N_BLOCKS): batch axis is "parallel" (megacore-shardable on v7x),
# block axis is "arbitrary" and carries the residual stream in the output
# block itself (its index does not change over the block axis).
# --------------------------------------------------------------------------
def decoder_stack_kernel(x_ref, xa_ref, mask_ref,
                         pvec_ref, b1_ref,
                         a_wqkv_ref, a_wo_ref,
                         c_wq_ref, c_wkv_ref, c_wo_ref,
                         w1_ref, w2_ref,
                         o_ref):
    n = pl.program_id(1)

    @pl.when(n == 0)
    def _init():
        o_ref[...] = x_ref[...]

    x = o_ref[0]                # (T, D) f32 residual stream (VMEM resident)
    xa = xa_ref[0]              # (S, D) f32
    mask = mask_ref[...]        # (T, T) f32 additive causal mask

    # Hoisted per-block parameter reads.
    pv = pvec_ref[0]            # (13, D) f32 packed LN gammas/betas + biases
    b1 = b1_ref[0]              # (1, N_MLP) f32
    a_wqkv = a_wqkv_ref[0]      # (D, 3D) bf16   fused self-attn q|k|v
    a_wo = a_wo_ref[0]          # (D, D)  bf16
    c_wq = c_wq_ref[0]          # (D, D)  bf16
    c_wkv = c_wkv_ref[0]        # (D, 2D) bf16   fused cross-attn k|v
    c_wo = c_wo_ref[0]          # (D, D)  bf16
    w1 = w1_ref[0]              # (D, N_MLP) bf16
    w2 = w2_ref[0]              # (N_MLP, D) bf16

    # --- self attention (causal): one fused (T, D) @ (D, 3D) QKV projection ---
    h = _layer_norm(x, pv[_LN0G:_LN0G + 1], pv[_LN0B:_LN0B + 1])
    qkv = jnp.dot(h.astype(jnp.bfloat16), a_wqkv,
                  preferred_element_type=jnp.float32)            # (T, 3D) f32
    q = (qkv[:, 0:D] + pv[_ABQ:_ABQ + 1]) * SCALE2
    k = qkv[:, D:2 * D]
    v = qkv[:, 2 * D:3 * D] + pv[_ABV:_ABV + 1]
    x = x + _attn_core(q, k, v, a_wo, pv[_ABO:_ABO + 1], mask)

    # --- cross attention over audio features (no mask) ---
    h = _layer_norm(x, pv[_LN1G:_LN1G + 1], pv[_LN1B:_LN1B + 1])
    q = (jnp.dot(h.astype(jnp.bfloat16), c_wq,
                 preferred_element_type=jnp.float32) + pv[_CBQ:_CBQ + 1]) * SCALE2
    kv = jnp.dot(xa.astype(jnp.bfloat16), c_wkv,
                 preferred_element_type=jnp.float32)             # (S, 2D) f32
    k = kv[:, 0:D]
    v = kv[:, D:2 * D] + pv[_CBV:_CBV + 1]
    x = x + _attn_core(q, k, v, c_wo, pv[_CBO:_CBO + 1], None)

    # --- MLP: flat Linear -> exact GELU -> flat Linear ---
    h = _layer_norm(x, pv[_LN2G:_LN2G + 1], pv[_LN2B:_LN2B + 1])
    h1 = jnp.dot(h.astype(jnp.bfloat16), w1,
                 preferred_element_type=jnp.float32) + b1
    h1 = 0.5 * h1 * (1.0 + jax.lax.erf(h1 * (2.0 ** -0.5)))
    x = x + jnp.dot(h1.astype(jnp.bfloat16), w2,
                    preferred_element_type=jnp.float32) + pv[_B2:_B2 + 1]

    o_ref[0] = x


def _batch_spec(shape):
    inner = tuple(shape[1:])
    zeros = (0,) * len(inner)
    return pl.BlockSpec((1,) + inner, lambda b, n: (b,) + zeros)


def _block_param_spec(shape):
    inner = tuple(shape[1:])
    zeros = (0,) * len(inner)
    return pl.BlockSpec((1,) + inner, lambda b, n: (n,) + zeros)


@jax.jit
def text_decoder_engine(x, xa, mask, packed):
    order = ["pvec", "b1", "a_wqkv", "a_wo", "c_wq", "c_wkv", "c_wo", "w1", "w2"]
    in_specs = [
        _batch_spec((B, T, D)),                     # x
        _batch_spec((B, S, D)),                     # xa
        pl.BlockSpec((T, T), lambda b, n: (0, 0)),  # mask
    ]
    in_specs += [_block_param_spec(packed[kname].shape) for kname in order]
    return pl.pallas_call(
        decoder_stack_kernel,
        out_shape=jax.ShapeDtypeStruct((B, T, D), jnp.float32),
        grid=(B, N_BLOCKS),
        in_specs=in_specs,
        # Output block is the residual accumulator: constant over the block axis.
        out_specs=pl.BlockSpec((1, T, D), lambda b, n: (b, 0, 0)),
        compiler_params=pltpu.CompilerParams(
            dimension_semantics=("parallel", "arbitrary"),
            vmem_limit_bytes=64 * 1024 * 1024,
        ),
    )(x, xa, mask, *(packed[kname] for kname in order))


# --------------------------------------------------------------------------
# Parameter construction and packing into the kernel layout.
# --------------------------------------------------------------------------
def _round_bf16(w):
    # Matmul weights are bf16 in the kernel; keep the f32 copy exactly
    # bf16-representable so the reference sees identical weight values.
    return w.astype(jnp.bfloat16).astype(jnp.float32)


def init_block_params(key):
    ks = jax.random.split(key, 10)

    def w(k, shape, scale):
        return scale * jax.random.normal(k, shape, dtype=jnp.float32)

    return {
        "ln_g": 1.0 + 0.02 * jax.random.normal(ks[0], (3, D), dtype=jnp.float32),
        "ln_b": 0.02 * jax.random.normal(ks[1], (3, D), dtype=jnp.float32),
        "attn_w": _round_bf16(w(ks[2], (4, D, D), D ** -0.5)),   # q, k, v, out (in, out)
        "attn_b": w(ks[3], (3, D), 0.02),                        # q, v, out biases
        "cross_w": _round_bf16(w(ks[4], (4, D, D), D ** -0.5)),
        "cross_b": w(ks[5], (3, D), 0.02),
        "w1": _round_bf16(w(ks[6], (D, N_MLP), D ** -0.5)),
        "b1": w(ks[7], (N_MLP,), 0.02),
        "w2": _round_bf16(w(ks[8], (N_MLP, D), N_MLP ** -0.5)),
        "b2": w(ks[9], (D,), 0.02),
    }


def pack_params(params):
    """Stack per-block params on a leading N_BLOCKS axis in the fused kernel layout."""
    def stack(fn):
        return jnp.stack([fn(p) for p in params], axis=0)

    return {
        # Small f32 params consolidated into one (13, D) pack per block.
        "pvec": stack(lambda p: jnp.stack(
            [p["ln_g"][0], p["ln_b"][0], p["ln_g"][1], p["ln_b"][1],
             p["ln_g"][2], p["ln_b"][2],
             p["attn_b"][0], p["attn_b"][1], p["attn_b"][2],
             p["cross_b"][0], p["cross_b"][1], p["cross_b"][2],
             p["b2"]], axis=0)),
        "b1": stack(lambda p: p["b1"].reshape(1, N_MLP)),
        # Fused self-attn QKV: (D, 3D); cross-attn q (D, D) and fused KV (D, 2D).
        "a_wqkv": stack(lambda p: jnp.concatenate(
            [p["attn_w"][0], p["attn_w"][1], p["attn_w"][2]], axis=1)).astype(jnp.bfloat16),
        "a_wo": stack(lambda p: p["attn_w"][3]).astype(jnp.bfloat16),
        "c_wq": stack(lambda p: p["cross_w"][0]).astype(jnp.bfloat16),
        "c_wkv": stack(lambda p: jnp.concatenate(
            [p["cross_w"][1], p["cross_w"][2]], axis=1)).astype(jnp.bfloat16),
        "c_wo": stack(lambda p: p["cross_w"][3]).astype(jnp.bfloat16),
        "w1": stack(lambda p: p["w1"]).astype(jnp.bfloat16),
        "w2": stack(lambda p: p["w2"]).astype(jnp.bfloat16),
    }


# --------------------------------------------------------------------------
# Plain-JAX f32 reference (same math / same weight values, no Pallas).
# --------------------------------------------------------------------------
def _ref_ln(h, g, b):
    mu = h.mean(-1, keepdims=True)
    var = ((h - mu) ** 2).mean(-1, keepdims=True)
    return (h - mu) / jnp.sqrt(var + LN_EPS) * g + b


def _ref_mha(hq, hkv, w, bias, mask):
    q = hq @ w[0] + bias[0]
    k = hkv @ w[1]
    v = hkv @ w[2] + bias[1]
    Tq, Tk = q.shape[0], k.shape[0]
    qh = q.reshape(Tq, H, DH).transpose(1, 0, 2) * SCALE
    kh = k.reshape(Tk, H, DH).transpose(1, 2, 0) * SCALE
    vh = v.reshape(Tk, H, DH).transpose(1, 0, 2)
    qk = qh @ kh
    if mask is not None:
        qk = qk + mask
    a = jax.nn.softmax(qk, axis=-1)
    o = (a @ vh).transpose(1, 0, 2).reshape(Tq, D)
    return o @ w[3] + bias[2]


def _ref_block(x, xa, mask, p):
    h = _ref_ln(x, p["ln_g"][0], p["ln_b"][0])
    x = x + _ref_mha(h, h, p["attn_w"], p["attn_b"], mask)
    h = _ref_ln(x, p["ln_g"][1], p["ln_b"][1])
    x = x + _ref_mha(h, xa, p["cross_w"], p["cross_b"], None)
    h = _ref_ln(x, p["ln_g"][2], p["ln_b"][2])
    h1 = h @ p["w1"] + p["b1"]
    h1 = 0.5 * h1 * (1.0 + jax.lax.erf(h1 / jnp.sqrt(2.0)))
    return x + h1 @ p["w2"] + p["b2"]


def reference(x, xa, mask, params):
    for p in params:
        x = jax.vmap(lambda xi, xai: _ref_block(xi, xai, mask, p))(x, xa)
    return x


# --------------------------------------------------------------------------
if __name__ == "__main__":
    key = jax.random.PRNGKey(0)
    kx, kxa, *kblocks = jax.random.split(key, 2 + N_BLOCKS)

    x = jax.random.normal(kx, (B, T, D), dtype=jnp.float32)
    xa = jax.random.normal(kxa, (B, S, D), dtype=jnp.float32)
    # Whisper causal mask: -inf strictly above the diagonal.
    mask = jnp.triu(jnp.full((T, T), -jnp.inf, dtype=jnp.float32), k=1)

    params = [init_block_params(k) for k in kblocks]
    packed = pack_params(params)

    out = jax.block_until_ready(text_decoder_engine(x, xa, mask, packed))
    ref = jax.block_until_ready(reference(x, xa, mask, params))

    assert out.shape == (B, T, D) and out.dtype == jnp.float32
    max_err = float(jnp.max(jnp.abs(out - ref)))
    # bf16 matmul operands with f32 accumulation vs the f32 reference.
    assert max_err < 5e-2, max_err

    print("KERNEL_OK")
</pallas_src>

<mosaic_0001>
module attributes {stable_mosaic.version = 11 : i64} {
  func.func @decoder_stack_kernel(%arg0: i32, %arg1: i32, %arg2: memref<1x8x32xf32, #tpu.memory_space<vmem>>, %arg3: memref<1x16x32xf32, #tpu.memory_space<vmem>>, %arg4: memref<8x8xf32, #tpu.memory_space<vmem>>, %arg5: memref<1x13x32xf32, #tpu.memory_space<vmem>>, %arg6: memref<1x1x128xf32, #tpu.memory_space<vmem>>, %arg7: memref<1x32x96xbf16, #tpu.memory_space<vmem>>, %arg8: memref<1x32x32xbf16, #tpu.memory_space<vmem>>, %arg9: memref<1x32x32xbf16, #tpu.memory_space<vmem>>, %arg10: memref<1x32x64xbf16, #tpu.memory_space<vmem>>, %arg11: memref<1x32x32xbf16, #tpu.memory_space<vmem>>, %arg12: memref<1x32x128xbf16, #tpu.memory_space<vmem>>, %arg13: memref<1x128x32xbf16, #tpu.memory_space<vmem>>, %arg14: memref<1x8x32xf32, #tpu.memory_space<vmem>>) attributes {dimension_semantics = [#tpu.dimension_semantics<parallel>, #tpu.dimension_semantics<arbitrary>], iteration_bounds = array<i64: 2, 2>, scalar_prefetch = 0 : i64, scratch_operands = 0 : i64, tpu.core_type = #tpu.core_type<tc>, window_params = [{transform_indices = @transform_0, window_bounds = array<i64: 1, 8, 32>}, {transform_indices = @transform_1, window_bounds = array<i64: 1, 16, 32>}, {pipeline_mode = #tpu.pipeline_mode<synchronous>, transform_indices = @transform_2, window_bounds = array<i64: 8, 8>}, {transform_indices = @transform_3, window_bounds = array<i64: 1, 13, 32>}, {transform_indices = @transform_4, window_bounds = array<i64: 1, 1, 128>}, {transform_indices = @transform_5, window_bounds = array<i64: 1, 32, 96>}, {transform_indices = @transform_6, window_bounds = array<i64: 1, 32, 32>}, {transform_indices = @transform_7, window_bounds = array<i64: 1, 32, 32>}, {transform_indices = @transform_8, window_bounds = array<i64: 1, 32, 64>}, {transform_indices = @transform_9, window_bounds = array<i64: 1, 32, 32>}, {transform_indices = @transform_10, window_bounds = array<i64: 1, 32, 128>}, {transform_indices = @transform_11, window_bounds = array<i64: 1, 128, 32>}, {transform_indices = @transform_12, window_bounds = array<i64: 1, 8, 32>}]} {
    %c0_i32 = arith.constant 0 : i32
    %0 = arith.cmpi eq, %arg1, %c0_i32 : i32
    %1 = arith.extui %0 : i1 to i32
    %c0_i32_0 = arith.constant 0 : i32
    %2 = arith.cmpi ne, %1, %c0_i32_0 : i32
    scf.if %2 {
      %c0_72 = arith.constant 0 : index
      %c0_73 = arith.constant 0 : index
      %c0_74 = arith.constant 0 : index
      %259 = vector.load %arg2[%c0_72, %c0_73, %c0_74] : memref<1x8x32xf32, #tpu.memory_space<vmem>>, vector<1x8x32xf32>
      %c0_75 = arith.constant 0 : index
      %c0_76 = arith.constant 0 : index
      %c0_77 = arith.constant 0 : index
      %260 = vector.load %arg14[%c0_75, %c0_76, %c0_77] : memref<1x8x32xf32, #tpu.memory_space<vmem>>, vector<1x8x32xf32>
      tpu.vector_store %arg14[%c0_75, %c0_76, %c0_77], %259 {strides = array<i32>} : memref<1x8x32xf32, #tpu.memory_space<vmem>>, vector<1x8x32xf32>,
    } else {
    }
    %c0 = arith.constant 0 : index
    %c0_1 = arith.constant 0 : index
    %c0_2 = arith.constant 0 : index
    %3 = vector.load %arg14[%c0, %c0_1, %c0_2] : memref<1x8x32xf32, #tpu.memory_space<vmem>>, vector<1x8x32xf32>
    %4 = vector.shape_cast %3 : vector<1x8x32xf32> to vector<8x32xf32>
    %c0_3 = arith.constant 0 : index
    %c0_4 = arith.constant 0 : index
    %c0_5 = arith.constant 0 : index
    %5 = vector.load %arg3[%c0_3, %c0_4, %c0_5] : memref<1x16x32xf32, #tpu.memory_space<vmem>>, vector<1x16x32xf32>
    %6 = vector.shape_cast %5 : vector<1x16x32xf32> to vector<16x32xf32>
    %c0_6 = arith.constant 0 : index
    %c0_7 = arith.constant 0 : index
    %7 = vector.load %arg4[%c0_6, %c0_7] : memref<8x8xf32, #tpu.memory_space<vmem>>, vector<8x8xf32>
    %c0_8 = arith.constant 0 : index
    %c0_9 = arith.constant 0 : index
    %c0_10 = arith.constant 0 : index
    %8 = vector.load %arg5[%c0_8, %c0_9, %c0_10] : memref<1x13x32xf32, #tpu.memory_space<vmem>>, vector<1x13x32xf32>
    %9 = vector.shape_cast %8 : vector<1x13x32xf32> to vector<13x32xf32>
    %c0_11 = arith.constant 0 : index
    %c0_12 = arith.constant 0 : index
    %c0_13 = arith.constant 0 : index
    %10 = vector.load %arg6[%c0_11, %c0_12, %c0_13] : memref<1x1x128xf32, #tpu.memory_space<vmem>>, vector<1x1x128xf32>
    %11 = vector.shape_cast %10 : vector<1x1x128xf32> to vector<1x128xf32>
    %c0_14 = arith.constant 0 : index
    %c0_15 = arith.constant 0 : index
    %c0_16 = arith.constant 0 : index
    %12 = vector.load %arg7[%c0_14, %c0_15, %c0_16] : memref<1x32x96xbf16, #tpu.memory_space<vmem>>, vector<1x32x96xbf16>
    %13 = vector.shape_cast %12 : vector<1x32x96xbf16> to vector<32x96xbf16>
    %c0_17 = arith.constant 0 : index
    %c0_18 = arith.constant 0 : index
    %c0_19 = arith.constant 0 : index
    %14 = vector.load %arg8[%c0_17, %c0_18, %c0_19] : memref<1x32x32xbf16, #tpu.memory_space<vmem>>, vector<1x32x32xbf16>
    %15 = vector.shape_cast %14 : vector<1x32x32xbf16> to vector<32x32xbf16>
    %c0_20 = arith.constant 0 : index
    %c0_21 = arith.constant 0 : index
    %c0_22 = arith.constant 0 : index
    %16 = vector.load %arg9[%c0_20, %c0_21, %c0_22] : memref<1x32x32xbf16, #tpu.memory_space<vmem>>, vector<1x32x32xbf16>
    %17 = vector.shape_cast %16 : vector<1x32x32xbf16> to vector<32x32xbf16>
    %c0_23 = arith.constant 0 : index
    %c0_24 = arith.constant 0 : index
    %c0_25 = arith.constant 0 : index
    %18 = vector.load %arg10[%c0_23, %c0_24, %c0_25] : memref<1x32x64xbf16, #tpu.memory_space<vmem>>, vector<1x32x64xbf16>
    %19 = vector.shape_cast %18 : vector<1x32x64xbf16> to vector<32x64xbf16>
    %c0_26 = arith.constant 0 : index
    %c0_27 = arith.constant 0 : index
    %c0_28 = arith.constant 0 : index
    %20 = vector.load %arg11[%c0_26, %c0_27, %c0_28] : memref<1x32x32xbf16, #tpu.memory_space<vmem>>, vector<1x32x32xbf16>
    %21 = vector.shape_cast %20 : vector<1x32x32xbf16> to vector<32x32xbf16>
    %c0_29 = arith.constant 0 : index
    %c0_30 = arith.constant 0 : index
    %c0_31 = arith.constant 0 : index
    %22 = vector.load %arg12[%c0_29, %c0_30, %c0_31] : memref<1x32x128xbf16, #tpu.memory_space<vmem>>, vector<1x32x128xbf16>
    %23 = vector.shape_cast %22 : vector<1x32x128xbf16> to vector<32x128xbf16>
    %c0_32 = arith.constant 0 : index
    %c0_33 = arith.constant 0 : index
    %c0_34 = arith.constant 0 : index
    %24 = vector.load %arg13[%c0_32, %c0_33, %c0_34] : memref<1x128x32xbf16, #tpu.memory_space<vmem>>, vector<1x128x32xbf16>
    %25 = vector.shape_cast %24 : vector<1x128x32xbf16> to vector<128x32xbf16>
    %26 = vector.extract_strided_slice %9 {offsets = [0, 0], sizes = [1, 32], strides = [1, 1]} : vector<13x32xf32> to vector<1x32xf32>
    %27 = vector.extract_strided_slice %9 {offsets = [1, 0], sizes = [1, 32], strides = [1, 1]} : vector<13x32xf32> to vector<1x32xf32>
    %cst = arith.constant dense<0.000000e+00> : vector<8xf32>
    %28 = vector.multi_reduction <add>, %4, %cst [1] : vector<8x32xf32> to vector<8xf32>
    %29 = vector.shape_cast %28 : vector<8xf32> to vector<8x1xf32>
    %cst_35 = arith.constant 3.200000e+01 : f32
    %30 = vector.broadcast %cst_35 : f32 to vector<8x1xf32>
    %31 = arith.divf %29, %30 : vector<8x1xf32>
    %32 = vector.broadcast %31 : vector<8x1xf32> to vector<8x32xf32>
    %33 = arith.subf %4, %32 : vector<8x32xf32>
    %34 = arith.mulf %33, %33 : vector<8x32xf32>
    %cst_36 = arith.constant dense<0.000000e+00> : vector<8xf32>
    %35 = vector.multi_reduction <add>, %34, %cst_36 [1] : vector<8x32xf32> to vector<8xf32>
    %36 = vector.shape_cast %35 : vector<8xf32> to vector<8x1xf32>
    %cst_37 = arith.constant 3.200000e+01 : f32
    %37 = vector.broadcast %cst_37 : f32 to vector<8x1xf32>
    %38 = arith.divf %36, %37 : vector<8x1xf32>
    %cst_38 = arith.constant 9.99999974E-6 : f32
    %39 = vector.broadcast %cst_38 : f32 to vector<8x1xf32>
    %40 = arith.addf %38, %39 : vector<8x1xf32>
    %41 = math.rsqrt %40 : vector<8x1xf32>
    %42 = vector.broadcast %41 : vector<8x1xf32> to vector<8x32xf32>
    %43 = arith.mulf %33, %42 : vector<8x32xf32>
    %44 = vector.broadcast %26 : vector<1x32xf32> to vector<8x32xf32>
    %45 = arith.mulf %43, %44 : vector<8x32xf32>
    %46 = vector.broadcast %27 : vector<1x32xf32> to vector<8x32xf32>
    %47 = arith.addf %45, %46 : vector<8x32xf32>
    %48 = arith.truncf %47 : vector<8x32xf32> to vector<8x32xbf16>
    %cst_39 = arith.constant dense<0.000000e+00> : vector<8x96xf32>
    %49 = tpu.matmul %48, %13, %cst_39 {dimension_numbers = #tpu.dot_dimension_numbers<[1], [0], [0], [1], [0, 0, 1, 1], [], []>} : vector<8x32xbf16>, vector<32x96xbf16>, vector<8x96xf32> -> vector<8x96xf32>
    %50 = vector.extract_strided_slice %49 {offsets = [0, 0], sizes = [8, 32], strides = [1, 1]} : vector<8x96xf32> to vector<8x32xf32>
    %51 = vector.extract_strided_slice %9 {offsets = [6, 0], sizes = [1, 32], strides = [1, 1]} : vector<13x32xf32> to vector<1x32xf32>
    %52 = vector.broadcast %51 : vector<1x32xf32> to vector<8x32xf32>
    %53 = arith.addf %50, %52 : vector<8x32xf32>
    %cst_40 = arith.constant 0.353553385 : f32
    %54 = vector.broadcast %cst_40 : f32 to vector<8x32xf32>
    %55 = arith.mulf %53, %54 : vector<8x32xf32>
    %56 = vector.extract_strided_slice %49 {offsets = [0, 32], sizes = [8, 32], strides = [1, 1]} : vector<8x96xf32> to vector<8x32xf32>
    %57 = vector.extract_strided_slice %49 {offsets = [0, 64], sizes = [8, 32], strides = [1, 1]} : vector<8x96xf32> to vector<8x32xf32>
    %58 = vector.extract_strided_slice %9 {offsets = [7, 0], sizes = [1, 32], strides = [1, 1]} : vector<13x32xf32> to vector<1x32xf32>
    %59 = vector.broadcast %58 : vector<1x32xf32> to vector<8x32xf32>
    %60 = arith.addf %57, %59 : vector<8x32xf32>
    %61 = vector.extract_strided_slice %9 {offsets = [8, 0], sizes = [1, 32], strides = [1, 1]} : vector<13x32xf32> to vector<1x32xf32>
    %62 = arith.truncf %55 : vector<8x32xf32> to vector<8x32xbf16>
    %63 = vector.extract_strided_slice %62 {offsets = [0, 0], sizes = [8, 8], strides = [1, 1]} : vector<8x32xbf16> to vector<8x8xbf16>
    %64 = vector.extract_strided_slice %62 {offsets = [0, 8], sizes = [8, 8], strides = [1, 1]} : vector<8x32xbf16> to vector<8x8xbf16>
    %65 = vector.extract_strided_slice %62 {offsets = [0, 16], sizes = [8, 8], strides = [1, 1]} : vector<8x32xbf16> to vector<8x8xbf16>
    %66 = vector.extract_strided_slice %62 {offsets = [0, 24], sizes = [8, 8], strides = [1, 1]} : vector<8x32xbf16> to vector<8x8xbf16>
    %67 = vector.shape_cast %63 : vector<8x8xbf16> to vector<1x8x8xbf16>
    %68 = vector.shape_cast %64 : vector<8x8xbf16> to vector<1x8x8xbf16>
    %69 = vector.shape_cast %65 : vector<8x8xbf16> to vector<1x8x8xbf16>
    %70 = vector.shape_cast %66 : vector<8x8xbf16> to vector<1x8x8xbf16>
    %71 = tpu.concatenate %67, %68, %69, %70 in 0 : vector<1x8x8xbf16>, vector<1x8x8xbf16>, vector<1x8x8xbf16>, vector<1x8x8xbf16> -> vector<4x8x8xbf16>
    %72 = arith.truncf %56 : vector<8x32xf32> to vector<8x32xbf16>
    %73 = vector.extract_strided_slice %72 {offsets = [0, 0], sizes = [8, 8], strides = [1, 1]} : vector<8x32xbf16> to vector<8x8xbf16>
    %74 = vector.extract_strided_slice %72 {offsets = [0, 8], sizes = [8, 8], strides = [1, 1]} : vector<8x32xbf16> to vector<8x8xbf16>
    %75 = vector.extract_strided_slice %72 {offsets = [0, 16], sizes = [8, 8], strides = [1, 1]} : vector<8x32xbf16> to vector<8x8xbf16>
    %76 = vector.extract_strided_slice %72 {offsets = [0, 24], sizes = [8, 8], strides = [1, 1]} : vector<8x32xbf16> to vector<8x8xbf16>
    %77 = vector.shape_cast %73 : vector<8x8xbf16> to vector<1x8x8xbf16>
    %78 = vector.shape_cast %74 : vector<8x8xbf16> to vector<1x8x8xbf16>
    %79 = vector.shape_cast %75 : vector<8x8xbf16> to vector<1x8x8xbf16>
    %80 = vector.shape_cast %76 : vector<8x8xbf16> to vector<1x8x8xbf16>
    %81 = tpu.concatenate %77, %78, %79, %80 in 0 : vector<1x8x8xbf16>, vector<1x8x8xbf16>, vector<1x8x8xbf16>, vector<1x8x8xbf16> -> vector<4x8x8xbf16>
    %82 = arith.truncf %60 : vector<8x32xf32> to vector<8x32xbf16>
    %83 = vector.extract_strided_slice %82 {offsets = [0, 0], sizes = [8, 8], strides = [1, 1]} : vector<8x32xbf16> to vector<8x8xbf16>
    %84 = vector.extract_strided_slice %82 {offsets = [0, 8], sizes = [8, 8], strides = [1, 1]} : vector<8x32xbf16> to vector<8x8xbf16>
    %85 = vector.extract_strided_slice %82 {offsets = [0, 16], sizes = [8, 8], strides = [1, 1]} : vector<8x32xbf16> to vector<8x8xbf16>
    %86 = vector.extract_strided_slice %82 {offsets = [0, 24], sizes = [8, 8], strides = [1, 1]} : vector<8x32xbf16> to vector<8x8xbf16>
    %87 = vector.shape_cast %83 : vector<8x8xbf16> to vector<1x8x8xbf16>
    %88 = vector.shape_cast %84 : vector<8x8xbf16> to vector<1x8x8xbf16>
    %89 = vector.shape_cast %85 : vector<8x8xbf16> to vector<1x8x8xbf16>
    %90 = vector.shape_cast %86 : vector<8x8xbf16> to vector<1x8x8xbf16>
    %91 = tpu.concatenate %87, %88, %89, %90 in 0 : vector<1x8x8xbf16>, vector<1x8x8xbf16>, vector<1x8x8xbf16>, vector<1x8x8xbf16> -> vector<4x8x8xbf16>
    "tpu.trace_start"() <{level = 10 : i32, message = "hqd,hkd->hqk"}> : () -> ()
    %cst_41 = arith.constant dense<0.000000e+00> : vector<4x8x8xf32>
    %92 = tpu.matmul %71, %81, %cst_41 {dimension_numbers = #tpu.dot_dimension_numbers<[2], [2], [1], [1], [0, 0, 0, 1, 1, 1], [0], [0]>} : vector<4x8x8xbf16>, vector<4x8x8xbf16>, vector<4x8x8xf32> -> vector<4x8x8xf32>
    "tpu.trace_stop"() : () -> ()
    %93 = vector.shape_cast %7 : vector<8x8xf32> to vector<1x8x8xf32>
    %94 = vector.broadcast %93 : vector<1x8x8xf32> to vector<4x8x8xf32>
    %95 = arith.addf %92, %94 : vector<4x8x8xf32>
    %cst_42 = arith.constant dense<0xFF800000> : vector<4x8xf32>
    %96 = vector.multi_reduction <maximumf>, %95, %cst_42 [2] : vector<4x8x8xf32> to vector<4x8xf32>
    %97 = vector.shape_cast %96 : vector<4x8xf32> to vector<4x8x1xf32>
    %98 = vector.broadcast %97 : vector<4x8x1xf32> to vector<4x8x8xf32>
    %99 = arith.subf %95, %98 : vector<4x8x8xf32>
    %100 = math.exp %99 : vector<4x8x8xf32>
    %cst_43 = arith.constant dense<0.000000e+00> : vector<4x8xf32>
    %101 = vector.multi_reduction <add>, %100, %cst_43 [2] : vector<4x8x8xf32> to vector<4x8xf32>
    %102 = vector.shape_cast %101 : vector<4x8xf32> to vector<4x8x1xf32>
    %103 = tpu.reciprocal %102 {approx = true} : vector<4x8x1xf32> -> vector<4x8x1xf32>
    %104 = vector.broadcast %103 : vector<4x8x1xf32> to vector<4x8x8xf32>
    %105 = arith.mulf %100, %104 : vector<4x8x8xf32>
    %106 = arith.truncf %105 : vector<4x8x8xf32> to vector<4x8x8xbf16>
    "tpu.trace_start"() <{level = 10 : i32, message = "hqk,hkd->hqd"}> : () -> ()
    %cst_44 = arith.constant dense<0.000000e+00> : vector<4x8x8xf32>
    %107 = tpu.matmul %106, %91, %cst_44 {dimension_numbers = #tpu.dot_dimension_numbers<[2], [1], [1], [2], [0, 0, 0, 1, 1, 2], [0], [0]>} : vector<4x8x8xbf16>, vector<4x8x8xbf16>, vector<4x8x8xf32> -> vector<4x8x8xf32>
    "tpu.trace_stop"() : () -> ()
    %108 = vector.extract_strided_slice %107 {offsets = [0, 0, 0], sizes = [1, 8, 8], strides = [1, 1, 1]} : vector<4x8x8xf32> to vector<1x8x8xf32>
    %109 = vector.shape_cast %108 : vector<1x8x8xf32> to vector<8x8xf32>
    %110 = vector.extract_strided_slice %107 {offsets = [1, 0, 0], sizes = [1, 8, 8], strides = [1, 1, 1]} : vector<4x8x8xf32> to vector<1x8x8xf32>
    %111 = vector.shape_cast %110 : vector<1x8x8xf32> to vector<8x8xf32>
    %112 = vector.extract_strided_slice %107 {offsets = [2, 0, 0], sizes = [1, 8, 8], strides = [1, 1, 1]} : vector<4x8x8xf32> to vector<1x8x8xf32>
    %113 = vector.shape_cast %112 : vector<1x8x8xf32> to vector<8x8xf32>
    %114 = vector.extract_strided_slice %107 {offsets = [3, 0, 0], sizes = [1, 8, 8], strides = [1, 1, 1]} : vector<4x8x8xf32> to vector<1x8x8xf32>
    %115 = vector.shape_cast %114 : vector<1x8x8xf32> to vector<8x8xf32>
    %116 = tpu.concatenate %109, %111, %113, %115 in 1 : vector<8x8xf32>, vector<8x8xf32>, vector<8x8xf32>, vector<8x8xf32> -> vector<8x32xf32>
    %117 = arith.truncf %116 : vector<8x32xf32> to vector<8x32xbf16>
    %cst_45 = arith.constant dense<0.000000e+00> : vector<8x32xf32>
    %118 = tpu.matmul %117, %15, %cst_45 {dimension_numbers = #tpu.dot_dimension_numbers<[1], [0], [0], [1], [0, 0, 1, 1], [], []>} : vector<8x32xbf16>, vector<32x32xbf16>, vector<8x32xf32> -> vector<8x32xf32>
    %119 = vector.broadcast %61 : vector<1x32xf32> to vector<8x32xf32>
    %120 = arith.addf %118, %119 : vector<8x32xf32>
    %121 = arith.addf %4, %120 : vector<8x32xf32>
    %122 = vector.extract_strided_slice %9 {offsets = [2, 0], sizes = [1, 32], strides = [1, 1]} : vector<13x32xf32> to vector<1x32xf32>
    %123 = vector.extract_strided_slice %9 {offsets = [3, 0], sizes = [1, 32], strides = [1, 1]} : vector<13x32xf32> to vector<1x32xf32>
    %cst_46 = arith.constant dense<0.000000e+00> : vector<8xf32>
    %124 = vector.multi_reduction <add>, %121, %cst_46 [1] : vector<8x32xf32> to vector<8xf32>
    %125 = vector.shape_cast %124 : vector<8xf32> to vector<8x1xf32>
    %cst_47 = arith.constant 3.200000e+01 : f32
    %126 = vector.broadcast %cst_47 : f32 to vector<8x1xf32>
    %127 = arith.divf %125, %126 : vector<8x1xf32>
    %128 = vector.broadcast %127 : vector<8x1xf32> to vector<8x32xf32>
    %129 = arith.subf %121, %128 : vector<8x32xf32>
    %130 = arith.mulf %129, %129 : vector<8x32xf32>
    %cst_48 = arith.constant dense<0.000000e+00> : vector<8xf32>
    %131 = vector.multi_reduction <add>, %130, %cst_48 [1] : vector<8x32xf32> to vector<8xf32>
    %132 = vector.shape_cast %131 : vector<8xf32> to vector<8x1xf32>
    %cst_49 = arith.constant 3.200000e+01 : f32
    %133 = vector.broadcast %cst_49 : f32 to vector<8x1xf32>
    %134 = arith.divf %132, %133 : vector<8x1xf32>
    %cst_50 = arith.constant 9.99999974E-6 : f32
    %135 = vector.broadcast %cst_50 : f32 to vector<8x1xf32>
    %136 = arith.addf %134, %135 : vector<8x1xf32>
    %137 = math.rsqrt %136 : vector<8x1xf32>
    %138 = vector.broadcast %137 : vector<8x1xf32> to vector<8x32xf32>
    %139 = arith.mulf %129, %138 : vector<8x32xf32>
    %140 = vector.broadcast %122 : vector<1x32xf32> to vector<8x32xf32>
    %141 = arith.mulf %139, %140 : vector<8x32xf32>
    %142 = vector.broadcast %123 : vector<1x32xf32> to vector<8x32xf32>
    %143 = arith.addf %141, %142 : vector<8x32xf32>
    %144 = arith.truncf %143 : vector<8x32xf32> to vector<8x32xbf16>
    %cst_51 = arith.constant dense<0.000000e+00> : vector<8x32xf32>
    %145 = tpu.matmul %144, %17, %cst_51 {dimension_numbers = #tpu.dot_dimension_numbers<[1], [0], [0], [1], [0, 0, 1, 1], [], []>} : vector<8x32xbf16>, vector<32x32xbf16>, vector<8x32xf32> -> vector<8x32xf32>
    %146 = vector.extract_strided_slice %9 {offsets = [9, 0], sizes = [1, 32], strides = [1, 1]} : vector<13x32xf32> to vector<1x32xf32>
    %147 = vector.broadcast %146 : vector<1x32xf32> to vector<8x32xf32>
    %148 = arith.addf %145, %147 : vector<8x32xf32>
    %cst_52 = arith.constant 0.353553385 : f32
    %149 = vector.broadcast %cst_52 : f32 to vector<8x32xf32>
    %150 = arith.mulf %148, %149 : vector<8x32xf32>
    %151 = arith.truncf %6 : vector<16x32xf32> to vector<16x32xbf16>
    %cst_53 = arith.constant dense<0.000000e+00> : vector<16x64xf32>
    %152 = tpu.matmul %151, %19, %cst_53 {dimension_numbers = #tpu.dot_dimension_numbers<[1], [0], [0], [1], [0, 0, 1, 1], [], []>} : vector<16x32xbf16>, vector<32x64xbf16>, vector<16x64xf32> -> vector<16x64xf32>
    %153 = vector.extract_strided_slice %152 {offsets = [0, 0], sizes = [16, 32], strides = [1, 1]} : vector<16x64xf32> to vector<16x32xf32>
    %154 = vector.extract_strided_slice %152 {offsets = [0, 32], sizes = [16, 32], strides = [1, 1]} : vector<16x64xf32> to vector<16x32xf32>
    %155 = vector.extract_strided_slice %9 {offsets = [10, 0], sizes = [1, 32], strides = [1, 1]} : vector<13x32xf32> to vector<1x32xf32>
    %156 = vector.broadcast %155 : vector<1x32xf32> to vector<16x32xf32>
    %157 = arith.addf %154, %156 : vector<16x32xf32>
    %158 = vector.extract_strided_slice %9 {offsets = [11, 0], sizes = [1, 32], strides = [1, 1]} : vector<13x32xf32> to vector<1x32xf32>
    %159 = arith.truncf %150 : vector<8x32xf32> to vector<8x32xbf16>
    %160 = vector.extract_strided_slice %159 {offsets = [0, 0], sizes = [8, 8], strides = [1, 1]} : vector<8x32xbf16> to vector<8x8xbf16>
    %161 = vector.extract_strided_slice %159 {offsets = [0, 8], sizes = [8, 8], strides = [1, 1]} : vector<8x32xbf16> to vector<8x8xbf16>
    %162 = vector.extract_strided_slice %159 {offsets = [0, 16], sizes = [8, 8], strides = [1, 1]} : vector<8x32xbf16> to vector<8x8xbf16>
    %163 = vector.extract_strided_slice %159 {offsets = [0, 24], sizes = [8, 8], strides = [1, 1]} : vector<8x32xbf16> to vector<8x8xbf16>
    %164 = vector.shape_cast %160 : vector<8x8xbf16> to vector<1x8x8xbf16>
    %165 = vector.shape_cast %161 : vector<8x8xbf16> to vector<1x8x8xbf16>
    %166 = vector.shape_cast %162 : vector<8x8xbf16> to vector<1x8x8xbf16>
    %167 = vector.shape_cast %163 : vector<8x8xbf16> to vector<1x8x8xbf16>
    %168 = tpu.concatenate %164, %165, %166, %167 in 0 : vector<1x8x8xbf16>, vector<1x8x8xbf16>, vector<1x8x8xbf16>, vector<1x8x8xbf16> -> vector<4x8x8xbf16>
    %169 = arith.truncf %153 : vector<16x32xf32> to vector<16x32xbf16>
    %170 = vector.extract_strided_slice %169 {offsets = [0, 0], sizes = [16, 8], strides = [1, 1]} : vector<16x32xbf16> to vector<16x8xbf16>
    %171 = vector.extract_strided_slice %169 {offsets = [0, 8], sizes = [16, 8], strides = [1, 1]} : vector<16x32xbf16> to vector<16x8xbf16>
    %172 = vector.extract_strided_slice %169 {offsets = [0, 16], sizes = [16, 8], strides = [1, 1]} : vector<16x32xbf16> to vector<16x8xbf16>
    %173 = vector.extract_strided_slice %169 {offsets = [0, 24], sizes = [16, 8], strides = [1, 1]} : vector<16x32xbf16> to vector<16x8xbf16>
    %174 = vector.shape_cast %170 : vector<16x8xbf16> to vector<1x16x8xbf16>
    %175 = vector.shape_cast %171 : vector<16x8xbf16> to vector<1x16x8xbf16>
    %176 = vector.shape_cast %172 : vector<16x8xbf16> to vector<1x16x8xbf16>
    %177 = vector.shape_cast %173 : vector<16x8xbf16> to vector<1x16x8xbf16>
    %178 = tpu.concatenate %174, %175, %176, %177 in 0 : vector<1x16x8xbf16>, vector<1x16x8xbf16>, vector<1x16x8xbf16>, vector<1x16x8xbf16> -> vector<4x16x8xbf16>
    %179 = arith.truncf %157 : vector<16x32xf32> to vector<16x32xbf16>
    %180 = vector.extract_strided_slice %179 {offsets = [0, 0], sizes = [16, 8], strides = [1, 1]} : vector<16x32xbf16> to vector<16x8xbf16>
    %181 = vector.extract_strided_slice %179 {offsets = [0, 8], sizes = [16, 8], strides = [1, 1]} : vector<16x32xbf16> to vector<16x8xbf16>
    %182 = vector.extract_strided_slice %179 {offsets = [0, 16], sizes = [16, 8], strides = [1, 1]} : vector<16x32xbf16> to vector<16x8xbf16>
    %183 = vector.extract_strided_slice %179 {offsets = [0, 24], sizes = [16, 8], strides = [1, 1]} : vector<16x32xbf16> to vector<16x8xbf16>
    %184 = vector.shape_cast %180 : vector<16x8xbf16> to vector<1x16x8xbf16>
    %185 = vector.shape_cast %181 : vector<16x8xbf16> to vector<1x16x8xbf16>
    %186 = vector.shape_cast %182 : vector<16x8xbf16> to vector<1x16x8xbf16>
    %187 = vector.shape_cast %183 : vector<16x8xbf16> to vector<1x16x8xbf16>
    %188 = tpu.concatenate %184, %185, %186, %187 in 0 : vector<1x16x8xbf16>, vector<1x16x8xbf16>, vector<1x16x8xbf16>, vector<1x16x8xbf16> -> vector<4x16x8xbf16>
    "tpu.trace_start"() <{level = 10 : i32, message = "hqd,hkd->hqk"}> : () -> ()
    %cst_54 = arith.constant dense<0.000000e+00> : vector<4x8x16xf32>
    %189 = tpu.matmul %168, %178, %cst_54 {dimension_numbers = #tpu.dot_dimension_numbers<[2], [2], [1], [1], [0, 0, 0, 1, 1, 1], [0], [0]>} : vector<4x8x8xbf16>, vector<4x16x8xbf16>, vector<4x8x16xf32> -> vector<4x8x16xf32>
    "tpu.trace_stop"() : () -> ()
    %cst_55 = arith.constant dense<0xFF800000> : vector<4x8xf32>
    %190 = vector.multi_reduction <maximumf>, %189, %cst_55 [2] : vector<4x8x16xf32> to vector<4x8xf32>
    %191 = vector.shape_cast %190 : vector<4x8xf32> to vector<4x8x1xf32>
    %192 = vector.broadcast %191 : vector<4x8x1xf32> to vector<4x8x16xf32>
    %193 = arith.subf %189, %192 : vector<4x8x16xf32>
    %194 = math.exp %193 : vector<4x8x16xf32>
    %cst_56 = arith.constant dense<0.000000e+00> : vector<4x8xf32>
    %195 = vector.multi_reduction <add>, %194, %cst_56 [2] : vector<4x8x16xf32> to vector<4x8xf32>
    %196 = vector.shape_cast %195 : vector<4x8xf32> to vector<4x8x1xf32>
    %197 = tpu.reciprocal %196 {approx = true} : vector<4x8x1xf32> -> vector<4x8x1xf32>
    %198 = vector.broadcast %197 : vector<4x8x1xf32> to vector<4x8x16xf32>
    %199 = arith.mulf %194, %198 : vector<4x8x16xf32>
    %200 = arith.truncf %199 : vector<4x8x16xf32> to vector<4x8x16xbf16>
    "tpu.trace_start"() <{level = 10 : i32, message = "hqk,hkd->hqd"}> : () -> ()
    %cst_57 = arith.constant dense<0.000000e+00> : vector<4x8x8xf32>
    %201 = tpu.matmul %200, %188, %cst_57 {dimension_numbers = #tpu.dot_dimension_numbers<[2], [1], [1], [2], [0, 0, 0, 1, 1, 2], [0], [0]>} : vector<4x8x16xbf16>, vector<4x16x8xbf16>, vector<4x8x8xf32> -> vector<4x8x8xf32>
    "tpu.trace_stop"() : () -> ()
    %202 = vector.extract_strided_slice %201 {offsets = [0, 0, 0], sizes = [1, 8, 8], strides = [1, 1, 1]} : vector<4x8x8xf32> to vector<1x8x8xf32>
    %203 = vector.shape_cast %202 : vector<1x8x8xf32> to vector<8x8xf32>
    %204 = vector.extract_strided_slice %201 {offsets = [1, 0, 0], sizes = [1, 8, 8], strides = [1, 1, 1]} : vector<4x8x8xf32> to vector<1x8x8xf32>
    %205 = vector.shape_cast %204 : vector<1x8x8xf32> to vector<8x8xf32>
    %206 = vector.extract_strided_slice %201 {offsets = [2, 0, 0], sizes = [1, 8, 8], strides = [1, 1, 1]} : vector<4x8x8xf32> to vector<1x8x8xf32>
    %207 = vector.shape_cast %206 : vector<1x8x8xf32> to vector<8x8xf32>
    %208 = vector.extract_strided_slice %201 {offsets = [3, 0, 0], sizes = [1, 8, 8], strides = [1, 1, 1]} : vector<4x8x8xf32> to vector<1x8x8xf32>
    %209 = vector.shape_cast %208 : vector<1x8x8xf32> to vector<8x8xf32>
    %210 = tpu.concatenate %203, %205, %207, %209 in 1 : vector<8x8xf32>, vector<8x8xf32>, vector<8x8xf32>, vector<8x8xf32> -> vector<8x32xf32>
    %211 = arith.truncf %210 : vector<8x32xf32> to vector<8x32xbf16>
    %cst_58 = arith.constant dense<0.000000e+00> : vector<8x32xf32>
    %212 = tpu.matmul %211, %21, %cst_58 {dimension_numbers = #tpu.dot_dimension_numbers<[1], [0], [0], [1], [0, 0, 1, 1], [], []>} : vector<8x32xbf16>, vector<32x32xbf16>, vector<8x32xf32> -> vector<8x32xf32>
    %213 = vector.broadcast %158 : vector<1x32xf32> to vector<8x32xf32>
    %214 = arith.addf %212, %213 : vector<8x32xf32>
    %215 = arith.addf %121, %214 : vector<8x32xf32>
    %216 = vector.extract_strided_slice %9 {offsets = [4, 0], sizes = [1, 32], strides = [1, 1]} : vector<13x32xf32> to vector<1x32xf32>
    %217 = vector.extract_strided_slice %9 {offsets = [5, 0], sizes = [1, 32], strides = [1, 1]} : vector<13x32xf32> to vector<1x32xf32>
    %cst_59 = arith.constant dense<0.000000e+00> : vector<8xf32>
    %218 = vector.multi_reduction <add>, %215, %cst_59 [1] : vector<8x32xf32> to vector<8xf32>
    %219 = vector.shape_cast %218 : vector<8xf32> to vector<8x1xf32>
    %cst_60 = arith.constant 3.200000e+01 : f32
    %220 = vector.broadcast %cst_60 : f32 to vector<8x1xf32>
    %221 = arith.divf %219, %220 : vector<8x1xf32>
    %222 = vector.broadcast %221 : vector<8x1xf32> to vector<8x32xf32>
    %223 = arith.subf %215, %222 : vector<8x32xf32>
    %224 = arith.mulf %223, %223 : vector<8x32xf32>
    %cst_61 = arith.constant dense<0.000000e+00> : vector<8xf32>
    %225 = vector.multi_reduction <add>, %224, %cst_61 [1] : vector<8x32xf32> to vector<8xf32>
    %226 = vector.shape_cast %225 : vector<8xf32> to vector<8x1xf32>
    %cst_62 = arith.constant 3.200000e+01 : f32
    %227 = vector.broadcast %cst_62 : f32 to vector<8x1xf32>
    %228 = arith.divf %226, %227 : vector<8x1xf32>
    %cst_63 = arith.constant 9.99999974E-6 : f32
    %229 = vector.broadcast %cst_63 : f32 to vector<8x1xf32>
    %230 = arith.addf %228, %229 : vector<8x1xf32>
    %231 = math.rsqrt %230 : vector<8x1xf32>
    %232 = vector.broadcast %231 : vector<8x1xf32> to vector<8x32xf32>
    %233 = arith.mulf %223, %232 : vector<8x32xf32>
    %234 = vector.broadcast %216 : vector<1x32xf32> to vector<8x32xf32>
    %235 = arith.mulf %233, %234 : vector<8x32xf32>
    %236 = vector.broadcast %217 : vector<1x32xf32> to vector<8x32xf32>
    %237 = arith.addf %235, %236 : vector<8x32xf32>
    %238 = arith.truncf %237 : vector<8x32xf32> to vector<8x32xbf16>
    %cst_64 = arith.constant dense<0.000000e+00> : vector<8x128xf32>
    %239 = tpu.matmul %238, %23, %cst_64 {dimension_numbers = #tpu.dot_dimension_numbers<[1], [0], [0], [1], [0, 0, 1, 1], [], []>} : vector<8x32xbf16>, vector<32x128xbf16>, vector<8x128xf32> -> vector<8x128xf32>
    %240 = vector.broadcast %11 : vector<1x128xf32> to vector<8x128xf32>
    %241 = arith.addf %239, %240 : vector<8x128xf32>
    %cst_65 = arith.constant 5.000000e-01 : f32
    %242 = vector.broadcast %cst_65 : f32 to vector<8x128xf32>
    %243 = arith.mulf %242, %241 : vector<8x128xf32>
    %cst_66 = arith.constant 0.707106769 : f32
    %244 = vector.broadcast %cst_66 : f32 to vector<8x128xf32>
    %245 = arith.mulf %241, %244 : vector<8x128xf32>
    %246 = math.erf %245 : vector<8x128xf32>
    %cst_67 = arith.constant 1.000000e+00 : f32
    %247 = vector.broadcast %cst_67 : f32 to vector<8x128xf32>
    %248 = arith.addf %247, %246 : vector<8x128xf32>
    %249 = arith.mulf %243, %248 : vector<8x128xf32>
    %250 = arith.truncf %249 : vector<8x128xf32> to vector<8x128xbf16>
    %cst_68 = arith.constant dense<0.000000e+00> : vector<8x32xf32>
    %251 = tpu.matmul %250, %25, %cst_68 {dimension_numbers = #tpu.dot_dimension_numbers<[1], [0], [0], [1], [0, 0, 1, 1], [], []>} : vector<8x128xbf16>, vector<128x32xbf16>, vector<8x32xf32> -> vector<8x32xf32>
    %252 = arith.addf %215, %251 : vector<8x32xf32>
    %253 = vector.extract_strided_slice %9 {offsets = [12, 0], sizes = [1, 32], strides = [1, 1]} : vector<13x32xf32> to vector<1x32xf32>
    %254 = vector.broadcast %253 : vector<1x32xf32> to vector<8x32xf32>
    %255 = arith.addf %252, %254 : vector<8x32xf32>
    %c0_69 = arith.constant 0 : index
    %c0_70 = arith.constant 0 : index
    %c0_71 = arith.constant 0 : index
    %256 = vector.load %arg14[%c0_69, %c0_70, %c0_71] : memref<1x8x32xf32, #tpu.memory_space<vmem>>, vector<1x8x32xf32>
    %257 = vector.shape_cast %256 : vector<1x8x32xf32> to vector<8x32xf32>
    %258 = vector.shape_cast %255 : vector<8x32xf32> to vector<1x8x32xf32>
    tpu.vector_store %arg14[%c0_69, %c0_70, %c0_71], %258 {strides = array<i32>} : memref<1x8x32xf32, #tpu.memory_space<vmem>>, vector<1x8x32xf32>,
    return
  }
  func.func @transform_0(%arg0: i32, %arg1: i32) -> (i32, i32, i32) {
    %c0_i32 = arith.constant 0 : i32
    %c0_i32_0 = arith.constant 0 : i32
    %c0_i32_1 = arith.constant 0 : i32
    return %arg0, %c0_i32, %c0_i32_0 : i32, i32, i32
  }
  func.func @transform_1(%arg0: i32, %arg1: i32) -> (i32, i32, i32) {
    %c0_i32 = arith.constant 0 : i32
    %c0_i32_0 = arith.constant 0 : i32
    %c0_i32_1 = arith.constant 0 : i32
    return %arg0, %c0_i32, %c0_i32_0 : i32, i32, i32
  }
  func.func @transform_2(%arg0: i32, %arg1: i32) -> (i32, i32) {
    %c0_i32 = arith.constant 0 : i32
    %c0_i32_0 = arith.constant 0 : i32
    %c0_i32_1 = arith.constant 0 : i32
    return %c0_i32, %c0_i32_0 : i32, i32
  }
  func.func @transform_3(%arg0: i32, %arg1: i32) -> (i32, i32, i32) {
    %c0_i32 = arith.constant 0 : i32
    %c0_i32_0 = arith.constant 0 : i32
    %c0_i32_1 = arith.constant 0 : i32
    return %arg1, %c0_i32, %c0_i32_0 : i32, i32, i32
  }
  func.func @transform_4(%arg0: i32, %arg1: i32) -> (i32, i32, i32) {
    %c0_i32 = arith.constant 0 : i32
    %c0_i32_0 = arith.constant 0 : i32
    %c0_i32_1 = arith.constant 0 : i32
    return %arg1, %c0_i32, %c0_i32_0 : i32, i32, i32
  }
  func.func @transform_5(%arg0: i32, %arg1: i32) -> (i32, i32, i32) {
    %c0_i32 = arith.constant 0 : i32
    %c0_i32_0 = arith.constant 0 : i32
    %c0_i32_1 = arith.constant 0 : i32
    return %arg1, %c0_i32, %c0_i32_0 : i32, i32, i32
  }
  func.func @transform_6(%arg0: i32, %arg1: i32) -> (i32, i32, i32) {
    %c0_i32 = arith.constant 0 : i32
    %c0_i32_0 = arith.constant 0 : i32
    %c0_i32_1 = arith.constant 0 : i32
    return %arg1, %c0_i32, %c0_i32_0 : i32, i32, i32
  }
  func.func @transform_7(%arg0: i32, %arg1: i32) -> (i32, i32, i32) {
    %c0_i32 = arith.constant 0 : i32
    %c0_i32_0 = arith.constant 0 : i32
    %c0_i32_1 = arith.constant 0 : i32
    return %arg1, %c0_i32, %c0_i32_0 : i32, i32, i32
  }
  func.func @transform_8(%arg0: i32, %arg1: i32) -> (i32, i32, i32) {
    %c0_i32 = arith.constant 0 : i32
    %c0_i32_0 = arith.constant 0 : i32
    %c0_i32_1 = arith.constant 0 : i32
    return %arg1, %c0_i32, %c0_i32_0 : i32, i32, i32
  }
  func.func @transform_9(%arg0: i32, %arg1: i32) -> (i32, i32, i32) {
    %c0_i32 = arith.constant 0 : i32
    %c0_i32_0 = arith.constant 0 : i32
    %c0_i32_1 = arith.constant 0 : i32
    return %arg1, %c0_i32, %c0_i32_0 : i32, i32, i32
  }
  func.func @transform_10(%arg0: i32, %arg1: i32) -> (i32, i32, i32) {
    %c0_i32 = arith.constant 0 : i32
    %c0_i32_0 = arith.constant 0 : i32
    %c0_i32_1 = arith.constant 0 : i32
    return %arg1, %c0_i32, %c0_i32_0 : i32, i32, i32
  }
  func.func @transform_11(%arg0: i32, %arg1: i32) -> (i32, i32, i32) {
    %c0_i32 = arith.constant 0 : i32
    %c0_i32_0 = arith.constant 0 : i32
    %c0_i32_1 = arith.constant 0 : i32
    return %arg1, %c0_i32, %c0_i32_0 : i32, i32, i32
  }
  func.func @transform_12(%arg0: i32, %arg1: i32) -> (i32, i32, i32) {
    %c0_i32 = arith.constant 0 : i32
    %c0_i32_0 = arith.constant 0 : i32
    %c0_i32_1 = arith.constant 0 : i32
    return %arg0, %c0_i32, %c0_i32_0 : i32, i32, i32
  }
}

</mosaic_0001>

<bundles_post_ra>
// kernel: text_decoder_engine.1
= control target key start
LH: loop header
LB: loop body
LE: loop exit
PB: predicated region body
PF: predicated region fallthrough
CT: control target
= control target key end

     0   :  { %s4861_s0 = inlined_call_operand.hbm [shape: f32[2,8,32], index: 0, kind: input, shape index: {}]   ;;  %s4862_s1 = inlined_call_operand.hbm [shape: f32[2,16,32], index: 1, kind: input, shape index: {}]   ;;  %s4863_s2 = inlined_call_operand.hbm [shape: f32[8,8], index: 2, kind: input, shape index: {}]   ;;  %s4864_s3 = inlined_call_operand.hbm [shape: f32[2,13,32], index: 3, kind: input, shape index: {}]   ;;  %s4865_s4 = inlined_call_operand.hbm [shape: f32[2,1,128], index: 4, kind: input, shape index: {}]   ;;  %s4866_s5 = inlined_call_operand.hbm [shape: bf16[2,32,96], index: 5, kind: input, shape index: {}]   ;;  %s4867_s6 = inlined_call_operand.hbm [shape: bf16[2,32,32], index: 6, kind: input, shape index: {}]   ;;  %s4868_s7 = inlined_call_operand.hbm [shape: bf16[2,32,32], index: 7, kind: input, shape index: {}]   ;;  %s4869_s8 = inlined_call_operand.hbm [shape: bf16[2,32,64], index: 8, kind: input, shape index: {}]   ;;  %s4870_s9 = inlined_call_operand.hbm [shape: bf16[2,32,32], index: 9, kind: input, shape index: {}]   ;;  %s4871_s10 = inlined_call_operand.hbm [shape: bf16[2,32,128], index: 10, kind: input, shape index: {}]   ;;  %s4872_s11 = inlined_call_operand.hbm [shape: bf16[2,128,32], index: 11, kind: input, shape index: {}]   ;;  %s4873_s12 = inlined_call_operand.hbm [shape: f32[2,8,32], index: 12, kind: output, shape index: {}]  }
   0x1   :  { %4911 = sst [smem:[#allocation45_spill]] %s4861_s0 }
   0x2   :  { %4912 = sst [smem:[#allocation46_spill]] %s4862_s1 }
   0x3   :  { %4913 = sst [smem:[#allocation47_spill]] %s4863_s2 }
   0x4   :  { %4914 = sst [smem:[#allocation48_spill]] %s4864_s3 }
   0x5   :  { %4915 = sst [smem:[#allocation49_spill]] %s4865_s4 }
   0x6   :  { %4916 = sst [smem:[#allocation50_spill]] %s4866_s5 }
   0x7   :  { %4917 = sst [smem:[#allocation51_spill]] %s4867_s6 }
   0x8   :  { %4918 = sst [smem:[#allocation52_spill]] %s4868_s7 }
   0x9   :  { %4919 = sst [smem:[#allocation53_spill]] %s4869_s8 }
   0xa   :  { %4920 = sst [smem:[#allocation54_spill]] %s4870_s9 }
   0xb   :  { %4921 = sst [smem:[#allocation55_spill]] %s4871_s10 }
   0xc   :  { %4922 = sst [smem:[#allocation56_spill]] %s4872_s11 }
   0xd   :  { %4923 = sst [smem:[#allocation57_spill]] %s4873_s12 }
   0xe   :  { %17 = vsyncpa [#allocation3], 0 }
   0xf   :  { %19 = vsyncpa [#allocation3 + $0x1], 0 }
  0x10   :  { %20 = vsyncpa [#allocation6], 0 }
  0x11   :  { %22 = vsyncpa [#allocation6 + $0x1], 0 }
  0x12   :  { %23 = vsyncpa [#allocation9], 0 }
  0x13   :  { %25 = vsyncpa [#allocation9 + $0x1], 0 }
  0x14   :  { %26 = vsyncpa [#allocation12], 0 }
  0x15   :  { %28 = vsyncpa [#allocation12 + $0x1], 0 }
  0x16   :  { %29 = vsyncpa [#allocation15], 0 }
  0x17   :  { %31 = vsyncpa [#allocation15 + $0x1], 0 }
  0x18   :  { %32 = vsyncpa [#allocation18], 0 }
  0x19   :  { %34 = vsyncpa [#allocation18 + $0x1], 0 }
  0x1a   :  { %35 = vsyncpa [#allocation21], 0 }
  0x1b   :  { %37 = vsyncpa [#allocation21 + $0x1], 0 }
  0x1c   :  { %38 = vsyncpa [#allocation4], 0 }
  0x1d   :  { %40 = vsyncpa [#allocation4 + $0x1], 0  ;;  %s3863_s21 = smov 0   ;;  %s3865_s22 = smov 0  }
  0x1e   :  { %s3867_s23 = smov 0   ;;  %s3869_s24 = smov 0  }
  0x1f   :  { %s3871_s25 = smov 0   ;;  %s3873_s26 = smov 0  }
  0x20   :  { %s3875_s27 = smov 0   ;;  %s3877_s28 = smov 0  }
  0x21   :  { %s3879_s29 = smov 0   ;;  %s3881_s30 = smov 0  }
  0x22   :  { %s3883_s13 = smov 0  }
  0x23 LB: > { %4924 = sst [smem:[#allocation32_spill]] %s3732_s22  ;;  %s3917_s14 = sadd.s32 4294967295, %s3768_s13   ;;  %s3768_s13 = sphi %s3883_s13, %s46_s13   ;;  %s3764_s30 = sphi %s3881_s30, %s4997_s30   ;;  %s3760_s29 = sphi %s3879_s29, %s5004_s29   ;;  %s3756_s28 = sphi %s3877_s28, %s4995_s28   ;;  %s3752_s27 = sphi %s3875_s27, %s5003_s27   ;;  %s3748_s26 = sphi %s3873_s26, %s5002_s26   ;;  %s3744_s25 = sphi %s3871_s25, %s5001_s25   ;;  %s3740_s24 = sphi %s3869_s24, %s5000_s24   ;;  %s3736_s23 = sphi %s3867_s23, %s4999_s23   ;;  %s3732_s22 = sphi %s3865_s22, %s4998_s22   ;;  %s3728_s21 = sphi %s3863_s21, %s4993_s21  }
  0x24   : > { %4925 = sst [smem:[#allocation33_spill]] %s3740_s24  ;;  %s2695_s15 = sadd.s32 4294967294, %s3768_s13  }
  0x25   : > { %4926 = sst [smem:[#allocation34_spill]] %s3752_s27  ;;  %p4886_p0 = scmp.eq.s32.totalorder %s3768_s13, 0 }
  0x26   : > { %4927 = sst [smem:[#allocation35_spill]] %s3756_s28  ;;  %p78_p1 = scmp.ne.s32.totalorder %s3744_s25, %s3740_s24 }
  0x27   : > { %4928 = sst [smem:[#allocation36_spill]] %s3764_s30  ;;  %p4883_p2 = scmp.eq.s32.totalorder %s3917_s14, 0 }
  0x28   : > { %4929 = sst [smem:[#allocation37_spill]] %s3917_s14  ;;  %p145_p3 = scmp.ne.s32.totalorder %s3736_s23, %s3732_s22 }
  0x29   : > { %p151_p4 = scmp.ne.s32.totalorder %s3732_s22, %s3728_s21  ;;  %p3930_p5 = por %p4883_p2, %p78_p1 }
  0x2a   : > { %p3937_p7 = por %p145_p3, %p4886_p0  ;;  %p389_p9 = scmp.eq.s32.totalorder %s2695_s15, 3 }
  0x2b   : > { %s4930_s17 = scalar_select %p3930_p5, 1, 0 }
  0x2c   : > { %p3943_p8 = por %p151_p4, %p4883_p2  ;;  %p2696_p10 = scmp.ge.s32.totalorder %s3768_s13, 1 }
  0x2d   : > { %4931 = sst [smem:[#allocation38_spill]] %s4930_s17  ;;  %p396_p11 = scmp.lt.s32.totalorder %s3768_s13, 5 }
  0x2e   : > { %s4933_s19 = scalar_select %p3943_p8, 1, 0 }
  0x2f   : > { %p3949_p12 = por %p389_p9, %p78_p1  ;;  %p3953_p13 = pnand %p2696_p10, %p396_p11 }
  0x30   : > { %4934 = sst [smem:[#allocation39_spill]] %s4933_s19  ;;  %s3770_s16 = smov [#allocation7]  }
  0x31   : > { %s4935_s20 = scalar_select %p3949_p12, 1, 0 }
  0x32   : > { %s4937_s21 = scalar_select %p3953_p13, 1, 0 }
  0x33   : > { %4936 = sst [smem:[#allocation40_spill]] %s4935_s20  ;;  %s409_s24 = sshll.u32 %s3770_s16, 4  ;;  %s410_s24 = int_to_ptr.vmem [resolvable:$true] %s409_s24 }
  0x34   : > { %4938 = sst [smem:[#allocation41_spill]] %s4937_s21  ;;  %p3050_p3 = pneg %p3953_p13 }
  0x35   : > { %p4885_p4 = scmp.lt.s32.totalorder %s3768_s13, 4  ;;  %s3961_s12 = sand.u32 1, %s3736_s23  }
  0x36   : > { %p3965_p6 = pnand %p3050_p3, %p4883_p2  ;;  %s3978_s28 = sand.u32 1, %s3768_s13  }
  0x37   : > { %p3973_p1 = pnand %p4885_p4, %p3937_p7  ;;  %s4941_s2 = sld [smem:[#allocation47_spill]] }
  0x38   : > { %p3262_p10 = pneg %p3965_p6 }
  0x39   : > { %s4940_s20 = scalar_select %p3973_p1, 1, 0 }
  0x3d   : > { %s3260_s19 = scalar_lea.hbm %s4941_s2, 128 }
  0x3e   : > { %p3261_p9 = scmp.ne.s32.totalorder %s4941_s2, %s3260_s19  ;;  %p3267_p7 = scmp.lt.u32.totalorder %s3260_s19, %s4941_s2 }
  0x40   : > { %p3263_p11 = pnand %p3262_p10, %p3261_p9 }
  0x42   : > { %p3264_p3 = pneg %p3263_p11 }
  0x44   : > { %p3269_p2 = pnand %p3267_p7, %p3264_p3 }
  0x46   : > { %3272 = shalt.err (!%p3269_p2)
}
  0x47   : > { %s3273_s11 = scalar_lea.vmem %s410_s24, 128  ;;  %p3281_p8 = scmp.lt.s32.totalorder %s410_s24, %s410_s24 }
  0x48   : > { %p3274_p4 = scmp.ne.s32.totalorder %s410_s24, %s3273_s11  ;;  %p3282_p5 = scmp.lt.s32.totalorder %s3273_s11, %s3273_s11 }
  0x4a   : > { %p3276_p0 = pnand %p3274_p4, %p3262_p10  ;;  %p3283_p13 = por %p3282_p5, %p3281_p8 }
  0x4c   : > { %p3277_p12 = pneg %p3276_p0 }
  0x4e   : > { %p3284_p1 = pnand %p3283_p13, %p3277_p12 }
  0x50   : > { %3287 = shalt.err (!%p3284_p1)
}
  0x51   : > { %3053 = dma.hbm_to_vmem [thread:$0]  (!%p3965_p6), %s4941_s2, 128, %s410_s24, [#allocation6]  }
  0x52   : > { %s3997_s17 = sshll.u32 %s3961_s12, 4  ;;  %s4000_s19 = sshll.u32 %s3760_s29, 8 }
  0x53   : > { %s4942_s3 = sld [smem:[#allocation48_spill]]  ;;  %s463_s15 = scalar_lea.vmem [#allocation8], %s3997_s17 }
  0x54   : > { %s470_s18 = sshll.u32 %s463_s15, 4  ;;  %p4943_p2 = scmp.ne.s32.totalorder %s4940_s20, 0  ;;  %s4009_s18 = int_to_ptr.vmem [resolvable:$true] %s470_s18 }
  0x56   : > { %p4016_p5 = pneg %p4943_p2 }
  0x59   : > { %s4006_s16 = scalar_lea.hbm %s4942_s3, %s4000_s19  ;;  %s3293_s2 = scalar_lea.hbm %s4942_s3, 512 }
  0x5a   : > { %s3288_s22 = scalar_lea.hbm %s4006_s16, 256  ;;  %p3294_p12 = scmp.lt.u32.totalorder %s4006_s16, %s4942_s3 }
  0x5b   : > { %p3289_p0 = scmp.ne.s32.totalorder %s4006_s16, %s3288_s22  ;;  %p3295_p13 = scmp.lt.u32.totalorder %s3293_s2, %s3288_s22 }
  0x5c   : > { %p3297_p1 = scmp.lt.u32.totalorder %s3288_s22, %s4006_s16 }
  0x5d   : > { %p3291_p6 = pnand %p4016_p5, %p3289_p0  ;;  %p3296_p4 = por %p3295_p13, %p3294_p12 }
  0x5f   : > { %p3292_p8 = pneg %p3291_p6  ;;  %p3298_p9 = por %p3297_p1, %p3296_p4 }
  0x61   : > { %p3299_p10 = pnand %p3298_p9, %p3292_p8 }
  0x63   : > { %3302 = shalt.err (!%p3299_p10)
}
  0x64   : > { %s3303_s24 = scalar_lea.vmem %s4009_s18, 256  ;;  %s3771_s11 = smov [#allocation8]  }
  0x65   : > { %p3304_p11 = scmp.ne.s32.totalorder %s4009_s18, %s3303_s24  ;;  %s3308_s21 = sshll.u32 %s3771_s11, 4  ;;  %s3309_s21 = int_to_ptr.vmem [resolvable:$false] %s3308_s21 }
  0x66   : > { %s3310_s10 = scalar_lea.vmem %s3309_s21, 512  ;;  %p3311_p0 = scmp.lt.s32.totalorder %s4009_s18, %s3309_s21 }
  0x67   : > { %p3306_p3 = pnand %p3304_p11, %p4016_p5  ;;  %p3312_p6 = scmp.lt.s32.totalorder %s3310_s10, %s3303_s24 }
  0x69   : > { %p3307_p7 = pneg %p3306_p3  ;;  %p3313_p12 = por %p3312_p6, %p3311_p0 }
  0x6b   : > { %p3314_p13 = pnand %p3313_p12, %p3307_p7 }
  0x6d   : > { %3317 = shalt.err (!%p3314_p13)
}
  0x6e   : > { %s4894_s2 = smov 128   ;;  %s4895_s22 = smov 8  }
  0x6f   : > { %s4945_s15 = scalar_lea.sflag [#allocation9], %s3978_s28  ;;  %s4946_s5 = sld [smem:[#allocation50_spill]] }
  0x70   : > { %3063 = dma.hbm_to_vmem [thread:$0]  (!%p4943_p2), %s4006_s16, 256, %s4009_s18, %s4945_s15, %s4894_s2, %s4894_s2, %s4895_s22  }
  0x71   : > { %s501_s10 = scalar_lea.vmem [#allocation11], %s3997_s17  ;;  %s4896_s8 = scalar_lea.sflag [#allocation12], %s3978_s28 }
  0x72   : > { %s508_s3 = sshll.u32 %s501_s10, 4  ;;  %s4051_s3 = int_to_ptr.vmem [resolvable:$true] %s508_s3 }
  0x75   : > { %s4048_s21 = scalar_lea.hbm %s4946_s5, %s4000_s19  ;;  %s3323_s15 = scalar_lea.hbm %s4946_s5, 512 }
  0x76   : > { %s3318_s6 = scalar_lea.hbm %s4048_s21, 256  ;;  %p3324_p9 = scmp.lt.u32.totalorder %s4048_s21, %s4946_s5 }
  0x77   : > { %p3319_p8 = scmp.ne.s32.totalorder %s4048_s21, %s3318_s6  ;;  %p3325_p10 = scmp.lt.u32.totalorder %s3323_s15, %s3318_s6 }
  0x78   : > { %p3327_p3 = scmp.lt.u32.totalorder %s3318_s6, %s4048_s21 }
  0x79   : > { %p3321_p4 = pnand %p3319_p8, %p4016_p5  ;;  %p3326_p11 = por %p3325_p10, %p3324_p9 }
  0x7b   : > { %p3322_p1 = pneg %p3321_p4  ;;  %p3328_p7 = por %p3327_p3, %p3326_p11 }
  0x7d   : > { %p3329_p0 = pnand %p3328_p7, %p3322_p1 }
  0x7f   : > { %3332 = shalt.err (!%p3329_p0)
}
  0x80   : > { %s3333_s10 = scalar_lea.vmem %s4051_s3, 256  ;;  %s3774_s16 = smov [#allocation11]  }
  0x81   : > { %p3334_p6 = scmp.ne.s32.totalorder %s4051_s3, %s3333_s10  ;;  %s3338_s18 = sshll.u32 %s3774_s16, 4  ;;  %s3339_s18 = int_to_ptr.vmem [resolvable:$false] %s3338_s18 }
  0x82   : > { %s3340_s24 = scalar_lea.vmem %s3339_s18, 512  ;;  %p3341_p8 = scmp.lt.s32.totalorder %s4051_s3, %s3339_s18 }
  0x83   : > { %p3336_p12 = pnand %p3334_p6, %p4016_p5  ;;  %p3342_p4 = scmp.lt.s32.totalorder %s3340_s24, %s3333_s10 }
  0x85   : > { %p3337_p13 = pneg %p3336_p12  ;;  %p3343_p9 = por %p3342_p4, %p3341_p8 }
  0x87   : > { %p3344_p10 = pnand %p3343_p9, %p3337_p13 }
  0x89   : > { %3347 = shalt.err (!%p3344_p10)
}
  0x8a   : > { %s4899_s6 = smov 64   ;;  %s4901_s15 = smov 4  }
  0x8b   : > { %3069 = dma.hbm_to_vmem [thread:$0]  (!%p4943_p2), %s4048_s21, 256, %s4051_s3, %s4896_s8, %s4899_s6, %s4899_s6, %s4901_s15  }
  0x8c   : > { %s4947_s7 = sld [smem:[#allocation52_spill]]  ;;  %s543_s18 = scalar_lea.vmem [#allocation14], %s3997_s17 }
  0x8d   : > { %s550_s24 = sshll.u32 %s543_s18, 4  ;;  %s4897_s2 = scalar_lea.sflag [#allocation15], %s3978_s28  ;;  %s4087_s24 = int_to_ptr.vmem [resolvable:$true] %s550_s24 }
  0x92   : > { %s4084_s16 = scalar_lea.hbm %s4947_s7, %s4000_s19  ;;  %s3353_s11 = scalar_lea.hbm %s4947_s7, 512 }
  0x93   : > { %s3348_s22 = scalar_lea.hbm %s4084_s16, 256  ;;  %p3354_p7 = scmp.lt.u32.totalorder %s4084_s16, %s4947_s7 }
  0x94   : > { %p3349_p1 = scmp.ne.s32.totalorder %s4084_s16, %s3348_s22  ;;  %p3355_p0 = scmp.lt.u32.totalorder %s3353_s11, %s3348_s22 }
  0x95   : > { %p3357_p12 = scmp.lt.u32.totalorder %s3348_s22, %s4084_s16 }
  0x96   : > { %p3351_p11 = pnand %p3349_p1, %p4016_p5  ;;  %p3356_p6 = por %p3355_p0, %p3354_p7 }
  0x98   : > { %p3352_p3 = pneg %p3351_p11  ;;  %p3358_p13 = por %p3357_p12, %p3356_p6 }
  0x9a   : > { %p3359_p8 = pnand %p3358_p13, %p3352_p3 }
  0x9c   : > { %3362 = shalt.err (!%p3359_p8)
}
  0x9d   : > { %s3363_s18 = scalar_lea.vmem %s4087_s24, 256  ;;  %s3777_s3 = smov [#allocation14]  }
  0x9e   : > { %p3364_p4 = scmp.ne.s32.totalorder %s4087_s24, %s3363_s18  ;;  %s3368_s21 = sshll.u32 %s3777_s3, 4  ;;  %s3369_s21 = int_to_ptr.vmem [resolvable:$false] %s3368_s21 }
  0x9f   : > { %s3370_s8 = scalar_lea.vmem %s3369_s21, 512  ;;  %p3371_p1 = scmp.lt.s32.totalorder %s4087_s24, %s3369_s21 }
  0xa0   : > { %p3366_p9 = pnand %p3364_p4, %p4016_p5  ;;  %p3372_p11 = scmp.lt.s32.totalorder %s3370_s8, %s3363_s18 }
  0xa2   : > { %p3367_p10 = pneg %p3366_p9  ;;  %p3373_p7 = por %p3372_p11, %p3371_p1 }
  0xa4   : > { %p3374_p0 = pnand %p3373_p7, %p3367_p10 }
  0xa6   : > { %3377 = shalt.err (!%p3374_p0)
}
  0xa7   : > { %3075 = dma.hbm_to_vmem [thread:$0]  (!%p4943_p2), %s4084_s16, 256, %s4087_s24, %s4897_s2, %s4899_s6, %s4899_s6, %s4901_s15  }
  0xa8   : > { %s4948_s9 = sld [smem:[#allocation54_spill]]  ;;  %s585_s18 = scalar_lea.vmem [#allocation17], %s3997_s17 }
  0xa9   : > { %s592_s3 = sshll.u32 %s585_s18, 4  ;;  %s4898_s21 = scalar_lea.sflag [#allocation18], %s3978_s28  ;;  %s4123_s3 = int_to_ptr.vmem [resolvable:$true] %s592_s3 }
  0xae   : > { %s4120_s10 = scalar_lea.hbm %s4948_s9, %s4000_s19  ;;  %s3383_s22 = scalar_lea.hbm %s4948_s9, 512 }
  0xaf   : > { %s3378_s8 = scalar_lea.hbm %s4120_s10, 256  ;;  %p3384_p13 = scmp.lt.u32.totalorder %s4120_s10, %s4948_s9 }
  0xb0   : > { %p3379_p3 = scmp.ne.s32.totalorder %s4120_s10, %s3378_s8  ;;  %p3385_p8 = scmp.lt.u32.totalorder %s3383_s22, %s3378_s8 }
  0xb1   : > { %p3387_p9 = scmp.lt.u32.totalorder %s3378_s8, %s4120_s10 }
  0xb2   : > { %p3381_p6 = pnand %p3379_p3, %p4016_p5  ;;  %p3386_p4 = por %p3385_p8, %p3384_p13 }
  0xb4   : > { %p3382_p12 = pneg %p3381_p6  ;;  %p3388_p10 = por %p3387_p9, %p3386_p4 }
  0xb6   : > { %p3389_p1 = pnand %p3388_p10, %p3382_p12 }
  0xb8   : > { %3392 = shalt.err (!%p3389_p1)
}
  0xb9   : > { %s3393_s18 = scalar_lea.vmem %s4123_s3, 256  ;;  %s3778_s16 = smov [#allocation17]  }
  0xba   : > { %p3394_p11 = scmp.ne.s32.totalorder %s4123_s3, %s3393_s18  ;;  %s3398_s24 = sshll.u32 %s3778_s16, 4  ;;  %s3399_s24 = int_to_ptr.vmem [resolvable:$false] %s3398_s24 }
  0xbb   : > { %s3400_s2 = scalar_lea.vmem %s3399_s24, 512  ;;  %p3401_p3 = scmp.lt.s32.totalorder %s4123_s3, %s3399_s24 }
  0xbc   : > { %p3396_p7 = pnand %p3394_p11, %p4016_p5  ;;  %p3402_p6 = scmp.lt.s32.totalorder %s3400_s2, %s3393_s18 }
  0xbe   : > { %p3397_p0 = pneg %p3396_p7  ;;  %p3403_p13 = por %p3402_p6, %p3401_p3 }
  0xc0   : > { %p3404_p8 = pnand %p3403_p13, %p3397_p0 }
  0xc2   : > { %3407 = shalt.err (!%p3404_p8)
}
  0xc3   : > { %3081 = dma.hbm_to_vmem [thread:$0]  (!%p4943_p2), %s4120_s10, 256, %s4123_s3, %s4898_s21, %s4899_s6, %s4899_s6, %s4901_s15  }
  0xc4   : > { %s55_s8 = sadd.s32 1, %s3760_s29  ;;  %s58_s22 = sadd.s32 1, %s3764_s30 }
  0xc5   : > { %p56_p12 = scmp.ge.s32.totalorder %s55_s8, 2  ;;  %s65_s11 = sadd.s32 1, %s3748_s26 }
  0xc6   : > { %p72_p4 = scmp.ne.s32.totalorder %s3748_s26, %s3744_s25  ;;  %s4158_s18 = sand.u32 1, %s3748_s26  }
  0xc7   : > { %s5006_s8 = smov (%p56_p12, %s55_s8), 0  ;;  %s5008_s22 = smov (!%p56_p12, %s58_s22), %s3764_s30 }
  0xc8   : > { %4949 = sst [smem:[#allocation42_spill]] %s5006_s8  ;;  %p4950_p9 = scmp.eq.s32.totalorder %s3768_s13, 0 }
  0xc9   : > { %s135_s10 = ssub.s32 %s3760_s29, %s5006_s8  ;;  %p60_p1 = scmp.ge.s32.totalorder %s5008_s22, 2 }
  0xca   : > { %p4165_p10 = por %p4950_p9, %p72_p4  ;;  %p136_p11 = scmp.eq.s32.totalorder %s135_s10, 0 }
  0xcb   : > { %p4952_p7 = scmp.eq.s32.totalorder %s3917_s14, 3  ;;  %s5010_s22 = smov (%p60_p1, %s5008_s22), 0 }
  0xcc   : > { %4954 = sst [smem:[#allocation43_spill]] %s5010_s22  ;;  %s4955_s24 = sadd.s32 1, %s3736_s23 }
  0xcd   : > { %p4173_p0 = por %p4952_p7, %p72_p4  ;;  %s62_s21 = ssub.s32 %s3764_s30, %s5010_s22 }
  0xce   : > { %s4182_s2 = scalar_select %p136_p11, %s3736_s23, %s4955_s24  }
  0xcf   : > { %s4953_s3 = scalar_select %p4173_p0, 1, 0 }
  0xd0   : > { %s2699_s6 = sshll.u32 %s4158_s18, 3  ;;  %p63_p3 = scmp.eq.s32.totalorder %s62_s21, 0 }
  0xd1   : > { %s2700_s15 = sshll.u32 %s3764_s30, 7  ;;  %s424_s5 = scalar_lea.vmem [#allocation2], %s2699_s6 }
  0xd2   : > { %s431_s7 = sshll.u32 %s424_s5, 4  ;;  %s4957_s0 = sld [smem:[#allocation45_spill]]  ;;  %s4196_s7 = int_to_ptr.vmem [resolvable:$true] %s431_s7 }
  0xd3   : > { %s4189_s9 = scalar_select %p63_p3, %s3748_s26, %s65_s11  }
  0xd4   : > { %p4958_p6 = scmp.lt.s32.totalorder %s3768_s13, 4  ;;  %s2701_s5 = sshll.u32 %s4158_s18, 4 }
  0xd5   : > { %4956 = sst [smem:[#allocation44_spill]] %s4189_s9  ;;  %s4207_s6 = scalar_lea.vmem [#allocation5], %s2701_s5 }
  0xd6   : > { %p4202_p13 = pnand %p4958_p6, %p4165_p10  ;;  %s421_s8 = scalar_lea.sflag [#allocation3], %s4158_s18 }
  0xd8   : > { %s4194_s14 = scalar_lea.hbm %s4957_s0, %s2700_s15  ;;  %s449_s15 = sshll.u32 %s4207_s6, 4  ;;  %s4238_s15 = int_to_ptr.vmem [resolvable:$true] %s449_s15 }
  0xd9   : > { %s3408_s11 = scalar_lea.hbm %s4194_s14, 128  ;;  %p3410_p12 = pneg %p4202_p13 }
  0xda   : > { %p3409_p8 = scmp.ne.s32.totalorder %s4194_s14, %s3408_s11  ;;  %s3413_s10 = scalar_lea.hbm %s4957_s0, 256 }
  0xdb   : > { %p3414_p10 = scmp.lt.u32.totalorder %s4194_s14, %s4957_s0  ;;  %p3415_p1 = scmp.lt.u32.totalorder %s3413_s10, %s3408_s11 }
  0xdc   : > { %p3411_p4 = pnand %p3410_p12, %p3409_p8  ;;  %p3417_p7 = scmp.lt.u32.totalorder %s3408_s11, %s4194_s14 }
  0xdd   : > { %p3416_p11 = por %p3415_p1, %p3414_p10 }
  0xde   : > { %p3412_p9 = pneg %p3411_p4 }
  0xdf   : > { %p3418_p3 = por %p3417_p7, %p3416_p11 }
  0xe1   : > { %p3419_p6 = pnand %p3418_p3, %p3412_p9 }
  0xe3   : > { %3422 = shalt.err (!%p3419_p6)
}
  0xe4   : > { %s3423_s18 = scalar_lea.vmem %s4196_s7, 128  ;;  %s3779_s5 = smov [#allocation2]  }
  0xe5   : > { %p3424_p8 = scmp.ne.s32.totalorder %s4196_s7, %s3423_s18  ;;  %s3428_s16 = sshll.u32 %s3779_s5, 4  ;;  %s3429_s16 = int_to_ptr.vmem [resolvable:$false] %s3428_s16 }
  0xe6   : > { %s3430_s9 = scalar_lea.vmem %s3429_s16, 256  ;;  %p3431_p2 = scmp.lt.s32.totalorder %s4196_s7, %s3429_s16 }
  0xe7   : > { %p3426_p4 = pnand %p3424_p8, %p3410_p12  ;;  %p3432_p10 = scmp.lt.s32.totalorder %s3430_s9, %s3423_s18 }
  0xe9   : > { %p3427_p0 = pneg %p3426_p4  ;;  %p3433_p1 = por %p3432_p10, %p3431_p2 }
  0xeb   : > { %p3434_p11 = pnand %p3433_p1, %p3427_p0 }
  0xed   : > { %3437 = shalt.err (!%p3434_p11)
}
  0xee   : > { %3057 = dma.hbm_to_vmem [thread:$0]  (!%p4202_p13), %s4194_s14, 128, %s4196_s7, %s421_s8  }
  0xef   : > { %s2790_s22 = sshll.u32 %s3764_s30, 8  ;;  %s4960_s1 = sld [smem:[#allocation46_spill]] }
  0xf0   : > { %s439_s18 = scalar_lea.sflag [#allocation6], %s3978_s28 }
  0xf5   : > { %s4244_s10 = scalar_lea.hbm %s4960_s1, %s2790_s22  ;;  %s3443_s6 = scalar_lea.hbm %s4960_s1, 512 }
  0xf6   : > { %s3438_s5 = scalar_lea.hbm %s4244_s10, 256  ;;  %p3444_p7 = scmp.lt.u32.totalorder %s4244_s10, %s4960_s1 }
  0xf7   : > { %p3439_p2 = scmp.ne.s32.totalorder %s4244_s10, %s3438_s5  ;;  %p3445_p3 = scmp.lt.u32.totalorder %s3443_s6, %s3438_s5 }
  0xf8   : > { %p3447_p8 = scmp.lt.u32.totalorder %s3438_s5, %s4244_s10 }
  0xf9   : > { %p3441_p0 = pnand %p3439_p2, %p3410_p12  ;;  %p3446_p6 = por %p3445_p3, %p3444_p7 }
  0xfb   : > { %p3442_p9 = pneg %p3441_p0  ;;  %p3448_p4 = por %p3447_p8, %p3446_p6 }
  0xfd   : > { %p3449_p10 = pnand %p3448_p4, %p3442_p9 }
  0xff   : > { %3452 = shalt.err (!%p3449_p10)
}
 0x100   : > { %s3453_s9 = scalar_lea.vmem %s4238_s15, 256  ;;  %s3780_s22 = smov [#allocation5]  }
 0x101   : > { %p3454_p1 = scmp.ne.s32.totalorder %s4238_s15, %s3453_s9  ;;  %s3458_s11 = sshll.u32 %s3780_s22, 4  ;;  %s3459_s11 = int_to_ptr.vmem [resolvable:$false] %s3458_s11 }
 0x102   : > { %s3460_s24 = scalar_lea.vmem %s3459_s11, 512  ;;  %p3461_p0 = scmp.lt.s32.totalorder %s4238_s15, %s3459_s11 }
 0x103   : > { %p3456_p11 = pnand %p3454_p1, %p3410_p12  ;;  %p3462_p7 = scmp.lt.s32.totalorder %s3460_s24, %s3453_s9 }
 0x105   : > { %p3457_p2 = pneg %p3456_p11  ;;  %p3463_p3 = por %p3462_p7, %p3461_p0 }
 0x107   : > { %p3464_p6 = pnand %p3463_p3, %p3457_p2 }
 0x109   : > { %3467 = shalt.err (!%p3464_p6)
}
 0x10a   : > { %s4961_s5 = smov 8   ;;  %s4962_s7 = smov 128  }
 0x10b   : > { %3060 = dma.hbm_to_vmem [thread:$0]  (!%p4202_p13), %s4244_s10, 256, %s4238_s15, %s439_s18, %s4962_s7, %s4962_s7, %s4961_s5  }
 0x10c   : > { %s2707_s14 = sshll.u32 %s3760_s29, 4  ;;  %s483_s6 = scalar_lea.vmem [#allocation10], %s3961_s12 }
 0x10d   : > { %s490_s8 = sshll.u32 %s483_s6, 4  ;;  %s4963_s4 = sld [smem:[#allocation49_spill]]  ;;  %s491_s8 = int_to_ptr.vmem [resolvable:$true] %s490_s8 }
 0x113   : > { %s488_s22 = scalar_lea.hbm %s4963_s4, %s2707_s14  ;;  %s3473_s0 = scalar_lea.hbm %s4963_s4, 32 }
 0x114   : > { %s3468_s21 = scalar_lea.hbm %s488_s22, 16  ;;  %p3474_p13 = scmp.lt.u32.totalorder %s488_s22, %s4963_s4 }
 0x115   : > { %p3469_p12 = scmp.ne.s32.totalorder %s488_s22, %s3468_s21  ;;  %p3475_p4 = scmp.lt.u32.totalorder %s3473_s0, %s3468_s21 }
 0x116   : > { %p3477_p1 = scmp.lt.u32.totalorder %s3468_s21, %s488_s22 }
 0x117   : > { %p3471_p9 = pnand %p3469_p12, %p4016_p5  ;;  %p3476_p10 = por %p3475_p4, %p3474_p13 }
 0x119   : > { %p3472_p8 = pneg %p3471_p9  ;;  %p3478_p11 = por %p3477_p1, %p3476_p10 }
 0x11b   : > { %p3479_p2 = pnand %p3478_p11, %p3472_p8 }
 0x11d   : > { %3482 = shalt.err (!%p3479_p2)
}
 0x11e   : > { %s3483_s15 = scalar_lea.vmem %s491_s8, 16  ;;  %s3781_s10 = smov [#allocation10]  }
 0x11f   : > { %p3484_p0 = scmp.ne.s32.totalorder %s491_s8, %s3483_s15  ;;  %s3488_s18 = sshll.u32 %s3781_s10, 4  ;;  %s3489_s18 = int_to_ptr.vmem [resolvable:$false] %s3488_s18 }
 0x120   : > { %s3490_s5 = scalar_lea.vmem %s3489_s18, 32  ;;  %p3491_p6 = scmp.lt.s32.totalorder %s491_s8, %s3489_s18 }
 0x121   : > { %p3486_p7 = pnand %p3484_p0, %p4016_p5  ;;  %p3492_p12 = scmp.lt.s32.totalorder %s3490_s5, %s3483_s15 }
 0x123   : > { %p3487_p3 = pneg %p3486_p7  ;;  %p3493_p9 = por %p3492_p12, %p3491_p6 }
 0x125   : > { %p3494_p4 = pnand %p3493_p9, %p3487_p3 }
 0x127   : > { %3497 = shalt.err (!%p3494_p4)
}
 0x128   : > { %p4964_p13 = scmp.ne.s32.totalorder %s4940_s20, 0  ;;  %s4965_s0 = scalar_lea.sflag [#allocation9], %s3978_s28 }
 0x129   : > { %s4966_s7 = sld [smem:[#allocation51_spill]]  ;;  %s522_s6 = scalar_lea.vmem [#allocation13], %s3997_s17 }
 0x12a   : > { %3066 = dma.hbm_to_vmem [thread:$0]  (!%p4964_p13), %s488_s22, 16, %s491_s8, %s4965_s0  }
 0x12b   : > { %s529_s16 = sshll.u32 %s522_s6, 4  ;;  %s4967_s11 = sld [smem:[#allocation53_spill]]  ;;  %s4301_s16 = int_to_ptr.vmem [resolvable:$true] %s529_s16 }
 0x12f   : > { %s4298_s14 = scalar_lea.hbm %s4966_s7, %s4000_s19  ;;  %s3503_s10 = scalar_lea.hbm %s4966_s7, 512 }
 0x130   : > { %s3498_s15 = scalar_lea.hbm %s4298_s14, 256  ;;  %p3504_p11 = scmp.lt.u32.totalorder %s4298_s14, %s4966_s7 }
 0x131   : > { %s4307_s24 = scalar_lea.hbm %s4967_s11, %s4000_s19  ;;  %p3499_p8 = scmp.ne.s32.totalorder %s4298_s14, %s3498_s15 }
 0x132   : > { %p3505_p2 = scmp.lt.u32.totalorder %s3503_s10, %s3498_s15  ;;  %p3507_p7 = scmp.lt.u32.totalorder %s3498_s15, %s4298_s14 }
 0x133   : > { %p3501_p10 = pnand %p3499_p8, %p4016_p5 }
 0x134   : > { %p3506_p0 = por %p3505_p2, %p3504_p11 }
 0x135   : > { %p3502_p1 = pneg %p3501_p10 }
 0x136   : > { %p3508_p3 = por %p3507_p7, %p3506_p0 }
 0x138   : > { %p3509_p6 = pnand %p3508_p3, %p3502_p1 }
 0x13a   : > { %3512 = shalt.err (!%p3509_p6)
}
 0x13b   : > { %s3513_s0 = scalar_lea.vmem %s4301_s16, 256  ;;  %s3782_s1 = smov [#allocation13]  }
 0x13c   : > { %p3514_p12 = scmp.ne.s32.totalorder %s4301_s16, %s3513_s0  ;;  %s3518_s30 = sshll.u32 %s3782_s1, 4  ;;  %s3519_s30 = int_to_ptr.vmem [resolvable:$false] %s3518_s30 }
 0x13d   : > { %s3520_s6 = scalar_lea.vmem %s3519_s30, 512  ;;  %p3521_p8 = scmp.lt.s32.totalorder %s4301_s16, %s3519_s30 }
 0x13e   : > { %p3516_p9 = pnand %p3514_p12, %p4016_p5  ;;  %p3522_p10 = scmp.lt.s32.totalorder %s3520_s6, %s3513_s0 }
 0x140   : > { %p3517_p4 = pneg %p3516_p9  ;;  %p3523_p11 = por %p3522_p10, %p3521_p8 }
 0x142   : > { %p3524_p2 = pnand %p3523_p11, %p3517_p4 }
 0x144   : > { %3527 = shalt.err (!%p3524_p2)
}
 0x145   : > { %s4968_s9 = smov 4   ;;  %s4969_s21 = smov 64  }
 0x146   : > { %s4970_s15 = scalar_lea.sflag [#allocation12], %s3978_s28  ;;  %s564_s8 = scalar_lea.vmem [#allocation16], %s3997_s17 }
 0x147   : > { %3072 = dma.hbm_to_vmem [thread:$0]  (!%p4964_p13), %s4298_s14, 256, %s4301_s16, %s4970_s15, %s4969_s21, %s4969_s21, %s4968_s9  }
 0x148   : > { %s571_s22 = sshll.u32 %s564_s8, 4  ;;  %s4971_s5 = sld [smem:[#allocation55_spill]]  ;;  %s4336_s22 = int_to_ptr.vmem [resolvable:$true] %s571_s22 }
 0x149   : > { %s3528_s1 = scalar_lea.hbm %s4307_s24, 256  ;;  %s3533_s4 = scalar_lea.hbm %s4967_s11, 512 }
 0x14a   : > { %p3529_p1 = scmp.ne.s32.totalorder %s4307_s24, %s3528_s1  ;;  %p3534_p3 = scmp.lt.u32.totalorder %s4307_s24, %s4967_s11 }
 0x14b   : > { %p3535_p6 = scmp.lt.u32.totalorder %s3533_s4, %s3528_s1  ;;  %p3537_p9 = scmp.lt.u32.totalorder %s3528_s1, %s4307_s24 }
 0x14c   : > { %p3531_p0 = pnand %p3529_p1, %p4016_p5 }
 0x14d   : > { %p3536_p12 = por %p3535_p6, %p3534_p3 }
 0x14e   : > { %s4342_s0 = scalar_lea.hbm %s4971_s5, %s4000_s19  ;;  %p3532_p7 = pneg %p3531_p0 }
 0x14f   : > { %p3538_p4 = por %p3537_p9, %p3536_p12 }
 0x151   : > { %p3539_p8 = pnand %p3538_p4, %p3532_p7 }
 0x153   : > { %3542 = shalt.err (!%p3539_p8)
}
 0x154   : > { %s3543_s19 = scalar_lea.vmem %s4336_s22, 256  ;;  %s3783_s16 = smov [#allocation16]  }
 0x155   : > { %p3544_p10 = scmp.ne.s32.totalorder %s4336_s22, %s3543_s19  ;;  %s3548_s15 = sshll.u32 %s3783_s16, 4  ;;  %s3549_s15 = int_to_ptr.vmem [resolvable:$false] %s3548_s15 }
 0x156   : > { %s3550_s7 = scalar_lea.vmem %s3549_s15, 512  ;;  %p3551_p1 = scmp.lt.s32.totalorder %s4336_s22, %s3549_s15 }
 0x157   : > { %p3546_p11 = pnand %p3544_p10, %p4016_p5  ;;  %p3552_p0 = scmp.lt.s32.totalorder %s3550_s7, %s3543_s19 }
 0x159   : > { %p3547_p2 = pneg %p3546_p11  ;;  %p3553_p3 = por %p3552_p0, %p3551_p1 }
 0x15b   : > { %p3554_p6 = pnand %p3553_p3, %p3547_p2 }
 0x15d   : > { %3557 = shalt.err (!%p3554_p6)
}
 0x15e   : > { %s4972_s4 = scalar_lea.sflag [#allocation15], %s3978_s28  ;;  %s606_s8 = scalar_lea.vmem [#allocation19], %s3997_s17 }
 0x15f   : > { %3078 = dma.hbm_to_vmem [thread:$0]  (!%p4964_p13), %s4307_s24, 256, %s4336_s22, %s4972_s4, %s4969_s21, %s4969_s21, %s4968_s9  }
 0x160   : > { %s613_s10 = sshll.u32 %s606_s8, 4  ;;  %s2726_s18 = sshll.u32 %s3961_s12, 6  ;;  %s4371_s10 = int_to_ptr.vmem [resolvable:$true] %s613_s10 }
 0x161   : > { %s3558_s1 = scalar_lea.hbm %s4342_s0, 256  ;;  %s3563_s14 = scalar_lea.hbm %s4971_s5, 512 }
 0x162   : > { %p3559_p7 = scmp.ne.s32.totalorder %s4342_s0, %s3558_s1  ;;  %p3564_p4 = scmp.lt.u32.totalorder %s4342_s0, %s4971_s5 }
 0x163   : > { %p3565_p8 = scmp.lt.u32.totalorder %s3563_s14, %s3558_s1  ;;  %p3567_p11 = scmp.lt.u32.totalorder %s3558_s1, %s4342_s0 }
 0x164   : > { %p3561_p12 = pnand %p3559_p7, %p4016_p5 }
 0x165   : > { %p3566_p10 = por %p3565_p8, %p3564_p4 }
 0x166   : > { %p3562_p9 = pneg %p3561_p12 }
 0x167   : > { %p3568_p2 = por %p3567_p11, %p3566_p10 }
 0x169   : > { %p3569_p1 = pnand %p3568_p2, %p3562_p9 }
 0x16b   : > { %3572 = shalt.err (!%p3569_p1)
}
 0x16c   : > { %s3573_s17 = scalar_lea.vmem %s4371_s10, 256  ;;  %s3784_s24 = smov [#allocation19]  }
 0x16d   : > { %p3574_p0 = scmp.ne.s32.totalorder %s4371_s10, %s3573_s17  ;;  %s3578_s22 = sshll.u32 %s3784_s24, 4  ;;  %s3579_s22 = int_to_ptr.vmem [resolvable:$false] %s3578_s22 }
 0x16e   : > { %s3580_s15 = scalar_lea.vmem %s3579_s22, 512  ;;  %p3581_p7 = scmp.lt.s32.totalorder %s4371_s10, %s3579_s22 }
 0x16f   : > { %p3576_p3 = pnand %p3574_p0, %p4016_p5  ;;  %p3582_p12 = scmp.lt.s32.totalorder %s3580_s15, %s3573_s17 }
 0x171   : > { %p3577_p6 = pneg %p3576_p3  ;;  %p3583_p4 = por %p3582_p12, %p3581_p7 }
 0x173   : > { %p3584_p8 = pnand %p3583_p4, %p3577_p6 }
 0x175   : > { %3587 = shalt.err (!%p3584_p8)
}
 0x176   : > { %s4973_s7 = scalar_lea.sflag [#allocation18], %s3978_s28  ;;  %s2798_s4 = sshll.u32 %s3760_s29, 10 }
 0x177   : > { %3084 = dma.hbm_to_vmem [thread:$0]  (!%p4964_p13), %s4342_s0, 256, %s4371_s10, %s4973_s7, %s4969_s21, %s4969_s21, %s4968_s9  }
 0x178   : > { %s4974_s30 = sld [smem:[#allocation56_spill]]  ;;  %s627_s19 = scalar_lea.vmem [#allocation20], %s2726_s18 }
 0x179   : > { %s634_s28 = sshll.u32 %s627_s19, 4  ;;  %s624_s16 = scalar_lea.sflag [#allocation21], %s3961_s12  ;;  %s4408_s28 = int_to_ptr.vmem [resolvable:$true] %s634_s28 }
 0x17e   : > { %s4975_s6 = smov %s4974_s30  ;;  %s4404_s14 = scalar_lea.hbm %s4974_s30, %s2798_s4 }
 0x17f   : > { %s3588_s17 = scalar_lea.hbm %s4404_s14, 1024  ;;  %s3593_s24 = scalar_lea.hbm %s4975_s6, 2048 }
 0x180   : > { %p3589_p9 = scmp.ne.s32.totalorder %s4404_s14, %s3588_s17  ;;  %p3594_p2 = scmp.lt.u32.totalorder %s4404_s14, %s4975_s6 }
 0x181   : > { %p3595_p1 = scmp.lt.u32.totalorder %s3593_s24, %s3588_s17  ;;  %p3597_p3 = scmp.lt.u32.totalorder %s3588_s17, %s4404_s14 }
 0x182   : > { %p3591_p10 = pnand %p3589_p9, %p4016_p5 }
 0x183   : > { %p3596_p0 = por %p3595_p1, %p3594_p2 }
 0x184   : > { %p3592_p11 = pneg %p3591_p10 }
 0x185   : > { %p3598_p6 = por %p3597_p3, %p3596_p0 }
 0x187   : > { %p3599_p7 = pnand %p3598_p6, %p3592_p11 }
 0x189   : > { %3602 = shalt.err (!%p3599_p7)
}
 0x18a   : > { %s3603_s18 = scalar_lea.vmem %s4408_s28, 1024  ;;  %s3785_s7 = smov [#allocation20]  }
 0x18b   : > { %p3604_p12 = scmp.ne.s32.totalorder %s4408_s28, %s3603_s18  ;;  %s3608_s4 = sshll.u32 %s3785_s7, 4  ;;  %s3609_s4 = int_to_ptr.vmem [resolvable:$false] %s3608_s4 }
 0x18c   : > { %s3610_s8 = scalar_lea.vmem %s3609_s4, 2048  ;;  %p3611_p9 = scmp.lt.s32.totalorder %s4408_s28, %s3609_s4 }
 0x18d   : > { %p3606_p4 = pnand %p3604_p12, %p4016_p5  ;;  %p3612_p10 = scmp.lt.s32.totalorder %s3610_s8, %s3603_s18 }
 0x18f   : > { %p3607_p8 = pneg %p3606_p4  ;;  %p3613_p2 = por %p3612_p10, %p3611_p9 }
 0x191   : > { %p3614_p1 = pnand %p3613_p2, %p3607_p8 }
 0x193   : > { %3617 = shalt.err (!%p3614_p1)
}
 0x194   : > { %3087 = dma.hbm_to_vmem [thread:$0]  (!%p4964_p13), %s4404_s14, 1024, %s4408_s28, %s624_s16, %s4969_s21, %s4969_s21, %s4968_s9  }
 0x195   : > { %s4976_s27 = sld [smem:[#allocation41_spill]] }
 0x19b   : > { %p4977_p5 = scmp.ne.s32.totalorder %s4976_s27, 0 }
 0x19c   : > { %s4978_s1 = sld [smem:[#allocation38_spill]] (!%p4977_p5)  ;;  %s4440_s30 = sand.u32 (!%p4977_p5), 1, %s3744_s25  }
 0x19d   : > { %646 = sbr.rel (%p4977_p5) target bundleno = 4855 (0x12f7), region = 68  ;;  %s2730_s19 = sshll.u32 (!%p4977_p5), %s4440_s30, 3 }
 0x19e   : > { %s649_s20 = scalar_lea.sflag (!%p4977_p5), [#allocation3], %s4440_s30  ;;  %s4446_s17 = scalar_lea.vmem (!%p4977_p5), [#allocation2], %s2730_s19 }
 0x1a2   : > { %p4979_p11 = scmp.ne.s32.totalorder (!%p4977_p5), %s4978_s1, 0 }
 0x1a4   : > { %3691 = dma.done.wait (%p4979_p11), %s649_s20, 128  }
 0x1a5   : > { %3693 = vsyncadd (%p4979_p11), %s649_s20, 4294967168  ;;  %s4980_s12 = sld [smem:[#allocation37_spill]]  ;;  %s2731_s21 = sshll.u32 %s4440_s30, 4 }
 0x1a6   : > { %s4454_s28 = scalar_lea.vmem [#allocation5], %s2731_s21 }
 0x1ab   : > { %s657_s9 = sand.u32 1, %s4980_s12  }
 0x1ac   : > { %s658_s14 = scalar_lea.sflag [#allocation6], %s657_s9 }
 0x1ad   : > { %3695 = dma.done.wait (%p4979_p11), %s658_s14, 256  }
 0x1ae   : > { %3697 = vsyncadd (%p4979_p11), %s658_s14, 4294967040  ;;  %p4981_p13 = scmp.eq.s32.totalorder %s4980_s12, 0 }
 0x1b0   : > { %3699 = dma.done.wait (%p4981_p13), [#allocation6], 128   ;;  %p4982_p0 = pmov %p4981_p13 }
 0x1b1   : > { %s4983_s16 = sld [smem:[#allocation32_spill]]  ;;  %s4984_s0 = sld [smem:[#allocation39_spill]] }
 0x1b2   : > { %3701 = vsyncadd (%p4982_p0), [#allocation6], 4294967168  ;;  %s671_s22 = scalar_lea.sflag [#allocation9], %s657_s9 }
 0x1b7   : > { %s4465_s10 = sand.u32 1, %s4983_s16   ;;  %p4985_p3 = scmp.ne.s32.totalorder %s4984_s0, 0 }
 0x1b8   : > { %s4468_s24 = sshll.u32 %s4465_s10, 4 }
 0x1b9   : > { %s674_s15 = scalar_lea.vmem [#allocation8], %s4468_s24 }
 0x1ba   : > { %3703 = dma.done.wait (%p4985_p3), %s671_s22, 272  }
 0x1bb   : > { %3705 = vsyncadd (%p4985_p3), %s671_s22, 4294967024  ;;  %s682_s18 = scalar_lea.vmem [#allocation10], %s4465_s10  ;;  %s688_s7 = scalar_lea.sflag [#allocation12], %s657_s9 }
 0x1bc   : > { %s691_s4 = scalar_lea.vmem [#allocation11], %s4468_s24 }
 0x1bd   : > { %3707 = dma.done.wait (%p4985_p3), %s688_s7, 512  }
 0x1be   : > { %3709 = vsyncadd (%p4985_p3), %s688_s7, 4294966784  ;;  %s700_s8 = scalar_lea.vmem [#allocation13], %s4468_s24  ;;  %s706_s27 = scalar_lea.sflag [#allocation15], %s657_s9 }
 0x1bf   : > { %s709_s1 = scalar_lea.vmem [#allocation14], %s4468_s24 }
 0x1c0   : > { %3711 = dma.done.wait (%p4985_p3), %s706_s27, 512  }
 0x1c1   : > { %3713 = vsyncadd (%p4985_p3), %s706_s27, 4294966784  ;;  %s718_s20 = scalar_lea.vmem [#allocation16], %s4468_s24  ;;  %s724_s12 = scalar_lea.sflag [#allocation18], %s657_s9 }
 0x1c2   : > { %s727_s21 = scalar_lea.vmem [#allocation17], %s4468_s24 }
 0x1c3   : > { %3715 = dma.done.wait (%p4985_p3), %s724_s12, 512  }
 0x1c4   : > { %3717 = vsyncadd (%p4985_p3), %s724_s12, 4294966784  ;;  %s2740_s14 = sshll.u32 %s4465_s10, 6  ;;  %s736_s16 = scalar_lea.vmem [#allocation19], %s4468_s24 }
 0x1c5   : > { %s742_s22 = scalar_lea.sflag [#allocation21], %s4465_s10  ;;  %s4496_s7 = scalar_lea.vmem [#allocation20], %s2740_s14 }
 0x1c6   : > { %3719 = dma.done.wait (%p4985_p3), %s742_s22, 1024  }
 0x1c7   : > { %3721 = vsyncadd (%p4985_p3), %s742_s22, 4294966272  ;;  %s4504_s9 = scalar_lea.vmem [#allocation22], %s2730_s19  ;;  %s4986_s27 = sld [smem:[#allocation34_spill]] }
 0x1cd   : > { %p2742_p6 = scmp.ne.s32.totalorder %s4986_s27, 0 }
 0x1ce   : > { %v840_v0 = vld [vmem:[%s4446_s17] sm:$0xff] (!%p2742_p6)  ;;  %vm841_vm0 = vcmask (!%p2742_p6), 261120  }
 0x1cf   : > { %839 = sbr.rel (%p2742_p6) target bundleno = 470 (0x1d6), region = 120  ;;  %842 = vst.msk [vmem:[%s4504_s9] sm:$0xff] (!%p2742_p6), %vm841_vm0, %v840_v0 }
 0x1d6 PF: > { %v4510_v1 = vld [vmem:[%s4504_s9] sm:$0xff]  ;;  %vm890_vm1 = vcmask 261120   ;;  %v3786_v9 = vmov 0.0   ;;  %vm3787_vm2 = vmmov 0   ;;  %v3201_v10 = vld [vmem:[%s691_s4 + $0x8] sm:$0xff]   ;;  %v905_v13 = vlaneseq  ;;  %s3788_s19 = smov 104  }
 0x1d7   : > { %v891_v2 = vsel %vm890_vm1, %v4510_v1, 0.0  ;;  %v3200_v8 = vld [vmem:[%s691_s4] sm:$0xff]   ;;  %2858 = vmatprep.subr.bf16.mxu1 %v3786_v9  ;;  %2862 = vmatprep.mubr.msk.bf16.mxu1 %vm3787_vm2, %v3786_v9  ;;  %s3789_s17 = smov 120   ;;  %s3790_s0 = smov 112   ;;  %vm1012_vm3 = vcmask 64512   ;;  %vm1256_vm4 = vcmask 1043456  }
 0x1d8   : > { %892 = vadd.xlane.f32.xlu0 %v891_v2  ;;  %2859 = vmatpush3.bf16.msra.mxu1 %v3200_v8  ;;  %v4528_v15 = vshrl.u32 %v905_v13, 7  ;;  %v4533_v17 = vld [vmem:[%s674_s15] sm:$0xff]  ;;  %s3791_s4 = smov 96   ;;  %s3792_s12 = smov 64   ;;  %v846_v52 = vld [vmem:[#allocation7] sm:$0xff]  ;;  %vm1457_vm5 = vcmask 130048  }
 0x1d9   : > { %2884 = vmatprep.subr.bf16.mxu0 %v3786_v9  ;;  %2860 = vmatprep.subr.bf16.mxu1 %v3786_v9  ;;  %s3793_s14 = smov 8   ;;  %s3794_s22 = smov 24   ;;  %vm1459_vm6 = vcmask 195584  }
 0x1da   : > { %2886 = vmatprep.mubr.msk.bf16.mxu0 %vm3787_vm2, %v3786_v9  ;;  %v907_v16 = vsub.s32 0, %v4528_v15  ;;  %v912_v18 = vsub.s32 1, %v4528_v15  ;;  %v973_v26 = vsub.s32 6, %v4528_v15  ;;  %v979_v41 = vsub.s32 7, %v4528_v15  ;;  %s3795_s27 = smov 16   ;;  %s4987_s24 = sld [smem:[#allocation35_spill]] }
 0x1db   : > { %p4989_p12 = scmp.ne.s32.totalorder %s4953_s3, 0 }
 0x1dc   : > { %2861 = vmatpush3.bf16.msra.mxu1 %v3201_v10  ;;  %v908_v19 = vrot.slane %v4533_v17, %v907_v16  ;;  %v913_v22 = vrot.slane %v4533_v17, %v912_v18  ;;  %v974_v27 = vrot.slane %v4533_v17, %v973_v26  ;;  %v980_v42 = vrot.slane %v4533_v17, %v979_v41 }
 0x1dd   : > { %2866 = vmatprep.subr.bf16.mxu1 %v3786_v9 }
 0x1e0   : > { %s2787_s10 = sshll.u32 %s4987_s24, 7 }
 0x265   : > { %v893_v3 = vpop.xlane.xlu0 %892 }
 0x266   : > { %v895_v4 = vmul.f32 0.03125, %v893_v3 }
 0x268   : > { %v896_v5 = vsub.f32 %v4510_v1, %v895_v4 }
 0x26a   : > { %v897_v6 = vmul.f32 %v896_v5, %v896_v5 }
 0x26c   : > { %v898_v7 = vsel %vm890_vm1, %v897_v6, 0.0 }
 0x26d   : > { %899 = vadd.xlane.f32.xlu0 %v898_v7 }
 0x2fa   : > { %v900_v11 = vpop.xlane.xlu0 %899 }
 0x2fb   : > { %v901_v12 = vmul.f32 0.03125, %v900_v11 }
 0x2fd   : > { %v902_v14 = vadd.f32 1e-05, %v901_v12 }
 0x2ff   : > { %3220 = vrsqrt.f32 %v902_v14 }
 0x309   : > { %v3221_v20 = vpop.eup %3220 }
 0x30a   : > { %v904_v21 = vmul.f32 %v3221_v20, %v896_v5 }
 0x30c   : > { %v909_v23 = vmul.f32 %v908_v19, %v904_v21 }
 0x30e   : > { %v914_v24 = vadd.f32 %v913_v22, %v909_v23 }
 0x310   : > { %v915_v25 = vpack.c.bf16 %v914_v24, %v914_v24 }
 0x312   : > { %2863 = vmatmul.mubr.msk.bf16.vlgmr.msra.gmra.mrb[0].mxu1 %vm890_vm1, %v915_v25 }
 0x313   : > { %2868 = vmatprep.mubr.msk.bf16.mxu1 %vm3787_vm2, %v3786_v9 }
 0x3e5   : > { %v4547_v28 = vpop.f32.mrb[0].mxu1 }
 0x3e6   : > { %v975_v29 = vadd.f32 %v974_v27, %v4547_v28  ;;  %v994_v30 = vpack.c.bf16 %v4547_v28, %v4547_v28  ;;  %v2864_v31 = vpop.f32.mrb[1].mxu1 }
 0x3e7   : > { %v968_v32 = vpop.f32.mrb[2].mxu1 }
 0x3e8   : > { %v976_v33 = vmul.f32 0.35355338, %v975_v29  ;;  %1000 = vrot.lane.b32.xlu0 %v994_v30, %s3788_s19  ;;  %996 = vrot.lane.b32.xlu1 %v994_v30, %s3789_s17  ;;  %v2865_v34 = vpop.f32.mrb[3].mxu1 }
 0x3ea   : > { %v986_v35 = vpack.c.bf16 %v976_v33, %v976_v33 }
 0x3ec   : > { %998 = vrot.lane.b32.xlu1 %v994_v30, %s3790_s0  ;;  %992 = vrot.lane.b32.xlu0 %v986_v35, %s3788_s19 }
 0x3f0   : > { %1010 = vrot.lane.b32.xlu1 %v994_v30, %s3791_s4 }
 0x45a   : > { %v997_v36 = vpop.permute.xlu1 %996  ;;  %v1001_v40 = vpop.permute.xlu0 %1000 }
 0x45b   : > { %1059 = vrot.lane.b32.xlu1 %v997_v36, %s3791_s4 }
 0x45e   : > { %v999_v37 = vpop.permute.xlu1 %998  ;;  %v993_v51 = vpop.permute.xlu0 %992 }
 0x45f   : > { %988 = vrot.lane.b32.xlu1 %v986_v35, %s3789_s17 }
 0x462   : > { %v1011_v38 = vpop.permute.xlu1 %1010 }
 0x463   : > { %v1017_v39 = vsel %vm1012_vm3, %v1011_v38, 0  ;;  %1107 = vrot.lane.b32.xlu1 %v999_v37, %s3791_s4 }
 0x464   : > { %2867 = vmatpush3.bf16.xpose.msra.mxu1 %v1017_v39 }
 0x465   : > { %2872 = vmatprep.subr.bf16.mxu1 %v3786_v9 }
 0x467   : > { %1155 = vrot.lane.b32.xlu1 %v1001_v40, %s3791_s4 }
 0x46b   : > { %990 = vrot.lane.b32.xlu1 %v986_v35, %s3790_s0  ;;  %2869 = vmatmul.mubr.msk.bf16.vlgmr.msra.gmra.mrb[4].mxu1 %vm1012_vm3, %v986_v35 }
 0x46c   : > { %2874 = vmatprep.mubr.msk.bf16.mxu1 %vm3787_vm2, %v3786_v9 }
 0x46f   : > { %982 = vrot.lane.b32.xlu1 %v980_v42, %s3792_s12 }
 0x4cd   : > { %v1060_v43 = vpop.permute.xlu1 %1059 }
 0x4ce   : > { %v1065_v44 = vsel %vm1012_vm3, %v1060_v43, 0 }
 0x4cf   : > { %2873 = vmatpush3.bf16.xpose.msra.mxu1 %v1065_v44 }
 0x4d0   : > { %2878 = vmatprep.subr.bf16.mxu1 %v3786_v9 }
 0x4d1   : > { %v989_v45 = vpop.permute.xlu1 %988 }
 0x4d5   : > { %v1108_v46 = vpop.permute.xlu1 %1107 }
 0x4d6   : > { %v1113_v47 = vsel %vm1012_vm3, %v1108_v46, 0  ;;  %2875 = vmatmul.mubr.msk.bf16.vlgmr.msra.gmra.mrb[8].mxu1 %vm1012_vm3, %v989_v45 }
 0x4d7   : > { %2879 = vmatpush3.bf16.xpose.msra.mxu1 %v1113_v47  ;;  %2880 = vmatprep.mubr.msk.bf16.mxu1 %vm3787_vm2, %v3786_v9 }
 0x4d8   : > { %2890 = vmatprep.subr.bf16.mxu1 %v3786_v9 }
 0x4d9   : > { %v1156_v48 = vpop.permute.xlu1 %1155 }
 0x4da   : > { %v1161_v49 = vsel %vm1012_vm3, %v1156_v48, 0 }
 0x4db   : > { %2885 = vmatpush3.bf16.xpose.msra.mxu0 %v1161_v49 }
 0x4dc   : > { %2896 = vmatprep.subr.bf16.mxu0 %v3786_v9 }
 0x4dd   : > { %v991_v50 = vpop.permute.xlu1 %990 }
 0x4de   : > { %2881 = vmatmul.mubr.msk.bf16.vlgmr.msra.gmra.mrb[12].mxu1 %vm1012_vm3, %v991_v50 }
 0x4df   : > { %2892 = vmatprep.mubr.msk.bf16.mxu1 %vm3787_vm2, %v3786_v9 }
 0x4e1   : > { %v983_v8 = vpop.permute.xlu1 %982 }
 0x4e2   : > { %2887 = vmatmul.mubr.msk.bf16.vlgmr.msra.gmra.mrb[0].mxu0 %vm1012_vm3, %v993_v51  ;;  %v985_v14 = vadd.f32 %v983_v8, %v4547_v28 }
 0x4e3   : > { %2898 = vmatprep.mubr.msk.bf16.mxu0 %vm3787_vm2, %v3786_v9 }
 0x4e4   : > { %v1002_v21 = vpack.c.bf16 %v985_v14, %v985_v14 }
 0x53e   : > { %v1053_v53 = vpop.f32.mrb[4].mxu1 }
 0x53f   : > { %v1054_v54 = vadd.f32 %v1053_v53, %v846_v52  ;;  %v2870_v55 = vpop.f32.mrb[5].mxu1 }
 0x540   : > { %v1056_v56 = vpop.f32.mrb[6].mxu1 }
 0x541   : > { %v2871_v57 = vpop.f32.mrb[7].mxu1  ;;  %v1203_v58 = vsel %vm1012_vm3, %v1054_v54, -inf }
 0x542   : > { %1204 = vmax.xlane.f32.xlu0 %v1203_v58 }
 0x5a9   : > { %v1101_v59 = vpop.f32.mrb[8].mxu1 }
 0x5aa   : > { %v1102_v60 = vadd.f32 %v1101_v59, %v846_v52  ;;  %v2876_v61 = vpop.f32.mrb[9].mxu1 }
 0x5ab   : > { %v1104_v62 = vpop.f32.mrb[10].mxu1 }
 0x5ac   : > { %v2877_v63 = vpop.f32.mrb[11].mxu1  ;;  %v1206_v0 = vsel %vm1012_vm3, %v1102_v60, -inf }
 0x5ad   : > { %1207 = vmax.xlane.f32.xlu1 %v1206_v0 }
 0x5b1   : > { %v1149_v2 = vpop.f32.mrb[12].mxu1 }
 0x5b2   : > { %v1150_v3 = vadd.f32 %v1149_v2, %v846_v52  ;;  %v2882_v4 = vpop.f32.mrb[13].mxu1 }
 0x5b3   : > { %v1152_v5 = vpop.f32.mrb[14].mxu1 }
 0x5b4   : > { %v2883_v6 = vpop.f32.mrb[15].mxu1  ;;  %v1209_v7 = vsel %vm1012_vm3, %v1150_v3, -inf }
 0x5b5   : > { %v1197_v10 = vpop.f32.mrb[0].mxu0  ;;  %1210 = vmax.xlane.f32.xlu0 %v1209_v7 }
 0x5b6   : > { %v1198_v11 = vadd.f32 %v1197_v10, %v846_v52  ;;  %v2888_v12 = vpop.f32.mrb[1].mxu0 }
 0x5b7   : > { %v1200_v13 = vpop.f32.mrb[2].mxu0  ;;  %v3203_v12 = vld [vmem:[%s700_s8 + $0x8] sm:$0xff]  }
 0x5b8   : > { %v2889_v19 = vpop.f32.mrb[3].mxu0  ;;  %v1212_v20 = vsel %vm1012_vm3, %v1198_v11, -inf }
 0x5b9   : > { %1213 = vmax.xlane.f32.xlu0 %v1212_v20 }
 0x5be   : > { %1004 = vrot.lane.b32.xlu1 %v1002_v21, %s3789_s17 }
 0x5c2   : > { %1008 = vrot.lane.b32.xlu1 %v1002_v21, %s3788_s19 }
 0x5cf   : > { %1006 = vrot.lane.b32.xlu0 %v1002_v21, %s3790_s0  ;;  %v1205_v25 = vpop.xlane.xlu0 %1204 }
 0x5d0   : > { %v1215_v34 = vsub.f32 %v1054_v54, %v1205_v25 }
 0x5d2   : > { %v1219_v38 = vmul.f32 1.442695, %v1215_v34 }
 0x5d3   : > { %1251 = vrot.lane.b32.xlu0 %v1002_v21, %s3792_s12 }
 0x63a   : > { %v1208_v22 = vpop.xlane.xlu1 %1207 }
 0x63b   : > { %v1216_v23 = vsub.f32 %v1102_v60, %v1208_v22 }
 0x63d   : > { %v1221_v24 = vmul.f32 1.442695, %v1216_v23 }
 0x63e   : > { %v1005_v26 = vpop.permute.xlu1 %1004 }
 0x63f   : > { %3222 = vpow2.f32 %v1221_v24  ;;  %1300 = vrot.lane.b32.xlu1 %v1005_v26, %s3792_s12 }
 0x642   : > { %v1211_v27 = vpop.xlane.xlu0 %1210  ;;  %v1009_v46 = vpop.permute.xlu1 %1008 }
 0x643   : > { %v1217_v28 = vsub.f32 %v1150_v3, %v1211_v27 }
 0x645   : > { %v1223_v29 = vmul.f32 1.442695, %v1217_v28 }
 0x646   : > { %v1214_v30 = vpop.xlane.xlu0 %1213 }
 0x647   : > { %3224 = vpow2.f32 %v1223_v29  ;;  %v1218_v39 = vsub.f32 %v1198_v11, %v1214_v30  ;;  %v3202_v11 = vld [vmem:[%s700_s8] sm:$0xff]  }
 0x648   : > { %3226 = vpow2.f32 %v1219_v38 }
 0x649   : > { %v3223_v31 = vpop.eup %3222  ;;  %v1225_v41 = vmul.f32 1.442695, %v1218_v39 }
 0x64a   : > { %v1007_v32 = vpop.permute.xlu0 %1006  ;;  %v1230_v33 = vsel %vm1012_vm3, %v3223_v31, 0.0 }
 0x64b   : > { %1231 = vadd.xlane.f32.xlu0 %v1230_v33  ;;  %3228 = vpow2.f32 %v1225_v41 }
 0x64e   : > { %v1252_v35 = vpop.permute.xlu0 %1251 }
 0x64f   : > { %v1258_v36 = vsel %vm1256_vm4, %v1252_v35, 0 }
 0x650   : > { %2891 = vmatpush3.bf16.msra.mxu1 %v1258_v36  ;;  %v4638_v36 = vld [vmem:[%s674_s15 + $0x8] sm:$0x1f]  ;;  %s2389_s15 = sshll.u32 %s4504_s9, 4  ;;  %s4798_s15 = int_to_ptr.vmem [resolvable:$true] %s2389_s15 }
 0x651   : > { %v3225_v37 = vpop.eup %3224  ;;  %2902 = vmatprep.subr.bf16.mxu1 %v3786_v9 }
 0x652   : > { %v1233_v40 = vsel %vm1012_vm3, %v3225_v37, 0.0  ;;  %v3227_v42 = vpop.eup %3226 }
 0x653   : > { %1234 = vadd.xlane.f32.xlu0 %v1233_v40  ;;  %v1227_v43 = vsel %vm1012_vm3, %v3227_v42, 0.0 }
 0x655   : > { %v3229_v44 = vpop.eup %3228 }
 0x656   : > { %v1236_v45 = vsel %vm1012_vm3, %v3229_v44, 0.0 }
 0x663   : > { %1228 = vadd.xlane.f32.xlu1 %v1227_v43 }
 0x667   : > { %1237 = vadd.xlane.f32.xlu1 %v1236_v45 }
 0x669   : > { %1396 = vrot.lane.b32.xlu0 %v1009_v46, %s3792_s12 }
 0x678   : > { %1348 = vrot.lane.b32.xlu1 %v1007_v32, %s3792_s12 }
 0x6b1   : > { %v1301_v47 = vpop.permute.xlu1 %1300 }
 0x6b2   : > { %v1306_v48 = vsel %vm1256_vm4, %v1301_v47, 0 }
 0x6b3   : > { %2897 = vmatpush3.bf16.msra.mxu0 %v1306_v48 }
 0x6b4   : > { %2908 = vmatprep.subr.bf16.mxu0 %v3786_v9 }
 0x6d8   : > { %v1232_v49 = vpop.xlane.xlu0 %1231 }
 0x6d9   : > { %3230 = vrcp.f32 %v1232_v49  ;;  %v3204_v49 = vld [vmem:[%s718_s20] sm:$0xff]  }
 0x6e0   : > { %v1235_v50 = vpop.xlane.xlu0 %1234 }
 0x6e3   : > { %v3231_v51 = vpop.eup %3230 }
 0x6e4   : > { %v1244_v52 = vmul.f32 %v3231_v51, %v3223_v31  ;;  %v1397_v53 = vpop.permute.xlu0 %1396  ;;  %v845_v51 = vld [vmem:[%s4454_s28 + $0x8] sm:$0xff] }
 0x6e5   : > { %v1402_v55 = vsel %vm1256_vm4, %v1397_v53, 0  ;;  %v3206_v53 = vld [vmem:[%s709_s1] sm:$0xff]  }
 0x6e6   : > { %v1248_v54 = vpack.c.bf16 %v1244_v52, %v1244_v52 }
 0x6e8   : > { %2899 = vmatmul.mubr.msk.bf16.vlgmr.msra.gmra.mrb[4].mxu0 %vm1012_vm3, %v1248_v54  ;;  %v3207_v54 = vld [vmem:[%s709_s1 + $0x8] sm:$0xff]   ;;  %s4988_s1 = sld [smem:[#allocation57_spill]] }
 0x6e9   : > { %2909 = vmatpush3.bf16.msra.mxu0 %v1402_v55  ;;  %2910 = vmatprep.mubr.msk.bf16.mxu0 %vm3787_vm2, %v3786_v9 }
 0x6ea   : > { %2922 = vmatprep.subr.bf16.mxu0 %v3786_v9 }
 0x6f0   : > { %v1229_v56 = vpop.xlane.xlu1 %1228 }
 0x6f1   : > { %3232 = vrcp.f32 %v1229_v56 }
 0x6f2   : > { %3234 = vrcp.f32 %v1235_v50  ;;  %v844_v50 = vld [vmem:[%s4454_s28] sm:$0xff]  ;;  %s3796_s28 = smov 32  }
 0x6f3   : > { %v1606_v52 = vpack.c.bf16 %v845_v51, %v844_v50 }
 0x6f4   : > { %v1238_v57 = vpop.xlane.xlu1 %1237 }
 0x6f5   : > { %3236 = vrcp.f32 %v1238_v57 }
 0x6f8   : > { %v1349_v60 = vpop.permute.xlu1 %1348 }
 0x6f9   : > { %v1354_v2 = vsel %vm1256_vm4, %v1349_v60, 0 }
 0x6fb   : > { %v3233_v58 = vpop.eup %3232 }
 0x6fc   : > { %v1243_v59 = vmul.f32 %v3233_v58, %v3227_v42  ;;  %v3235_v61 = vpop.eup %3234  ;;  %v1537_v58 = vsub.s32 2, %v4528_v15 }
 0x6fd   : > { %v1245_v3 = vmul.f32 %v3235_v61, %v3225_v37  ;;  %v1465_v37 = vrot.slane %v4638_v36, %v907_v16 }
 0x6fe   : > { %v1247_v62 = vpack.c.bf16 %v1243_v59, %v1243_v59  ;;  %v1542_v59 = vsub.s32 3, %v4528_v15  ;;  %v1538_v60 = vrot.slane %v4533_v17, %v1537_v58 }
 0x6ff   : > { %v3237_v63 = vpop.eup %3236  ;;  %v1249_v5 = vpack.c.bf16 %v1245_v3, %v1245_v3 }
 0x700   : > { %v1246_v0 = vmul.f32 %v3237_v63, %v3229_v44  ;;  %2893 = vmatmul.mubr.msk.bf16.vlgmr.msra.gmra.mrb[16].mxu1 %vm1012_vm3, %v1247_v62  ;;  %v1543_v63 = vrot.slane %v4533_v17, %v1542_v59 }
 0x701   : > { %2903 = vmatpush3.bf16.msra.mxu1 %v1354_v2  ;;  %2904 = vmatprep.mubr.msk.bf16.mxu1 %vm3787_vm2, %v3786_v9 }
 0x702   : > { %v1250_v4 = vpack.c.bf16 %v1246_v0, %v1246_v0  ;;  %2914 = vmatprep.subr.bf16.mxu1 %v3786_v9 }
 0x704   : > { %2911 = vmatmul.mubr.msk.bf16.vlgmr.msra.gmra.mrb[8].mxu0 %vm1012_vm3, %v1250_v4 }
 0x705   : > { %2926 = vmatprep.mubr.msk.bf16.mxu0 %vm3787_vm2, %v3786_v9  ;;  %2923 = vmatpush3.bf16.msra.mxu0 %v3206_v53 }
 0x706   : > { %2924 = vmatprep.subr.bf16.mxu0 %v3786_v9 }
 0x708   : > { %2905 = vmatmul.mubr.msk.bf16.vlgmr.msra.gmra.mrb[20].mxu1 %vm1012_vm3, %v1249_v5 }
 0x709   : > { %2918 = vmatprep.mubr.msk.bf16.mxu1 %vm3787_vm2, %v3786_v9  ;;  %2915 = vmatpush3.bf16.msra.mxu1 %v3202_v11 }
 0x70a   : > { %2916 = vmatprep.subr.bf16.mxu1 %v3786_v9  ;;  %2925 = vmatpush3.bf16.msra.mxu0 %v3207_v54 }
 0x70b   : > { %2938 = vmatprep.subr.bf16.mxu0 %v3786_v9 }
 0x70d   : > { %2917 = vmatpush3.bf16.msra.mxu1 %v3203_v12 }
 0x70e   : > { %2930 = vmatprep.subr.bf16.mxu1 %v3786_v9 }
 0x7bb   : > { %v1342_v6 = vpop.f32.mrb[4].mxu0 }
 0x7bc   : > { %1445 = vrot.lane.b32.xlu1 %v1342_v6, %s3793_s14  ;;  %v2900_v7 = vpop.f32.mrb[5].mxu0 }
 0x7bd   : > { %v1345_v8 = vpop.f32.mrb[6].mxu0 }
 0x7be   : > { %v2901_v10 = vpop.f32.mrb[7].mxu0 }
 0x7d3   : > { %v1294_v13 = vpop.f32.mrb[16].mxu1 }
 0x7d4   : > { %v2894_v14 = vpop.f32.mrb[17].mxu1 }
 0x7d5   : > { %v1297_v19 = vpop.f32.mrb[18].mxu1 }
 0x7d6   : > { %v2895_v20 = vpop.f32.mrb[19].mxu1 }
 0x7d7   : > { %v1438_v21 = vpop.f32.mrb[8].mxu0 }
 0x7d8   : > { %1453 = vrot.lane.b32.xlu1 %v1438_v21, %s3794_s22  ;;  %v2912_v22 = vpop.f32.mrb[9].mxu0 }
 0x7d9   : > { %v1441_v23 = vpop.f32.mrb[10].mxu0 }
 0x7da   : > { %v2913_v24 = vpop.f32.mrb[11].mxu0 }
 0x7db   : > { %v1390_v25 = vpop.f32.mrb[20].mxu1 }
 0x7dc   : > { %1449 = vrot.lane.b32.xlu0 %v1390_v25, %s3795_s27  ;;  %v2906_v26 = vpop.f32.mrb[21].mxu1 }
 0x7dd   : > { %v1393_v27 = vpop.f32.mrb[22].mxu1 }
 0x7de   : > { %v2907_v28 = vpop.f32.mrb[23].mxu1 }
 0x82e   : > { %v1446_v29 = vpop.permute.xlu1 %1445 }
 0x82f   : > { %v1456_v30 = vsel %vm1012_vm3, %v1294_v13, %v1446_v29  ;;  %v1549_v13 = vrot.slane %v4638_v36, %v912_v18  ;;  %v1666_v18 = vrot.slane %v4638_v36, %v1537_v58 }
 0x84a   : > { %v1454_v32 = vpop.permute.xlu1 %1453 }
 0x84e   : > { %v1450_v31 = vpop.permute.xlu0 %1449 }
 0x84f   : > { %v1458_v33 = vsel %vm1457_vm5, %v1456_v30, %v1450_v31 }
 0x850   : > { %v1460_v34 = vsel %vm1459_vm6, %v1458_v33, %v1454_v32 }
 0x851   : > { %v1461_v35 = vpack.c.bf16 %v1460_v34, %v1460_v34 }
 0x853   : > { %2919 = vmatmul.mubr.msk.bf16.vlgmr.msra.gmra.mrb[24].mxu1 %vm890_vm1, %v1461_v35 }
 0x854   : > { %2934 = vmatprep.mubr.msk.bf16.mxu1 %vm3787_vm2, %v3786_v9  ;;  %2931 = vmatpush3.bf16.msra.mxu1 %v3204_v49 }
 0x855   : > { %2932 = vmatprep.subr.bf16.mxu1 %v3786_v9 }
 0x926   : > { %v1515_v38 = vpop.f32.mrb[24].mxu1 }
 0x927   : > { %v1516_v39 = vadd.f32 %v1515_v38, %v1465_v37  ;;  %v2920_v40 = vpop.f32.mrb[25].mxu1 }
 0x928   : > { %v1518_v41 = vpop.f32.mrb[26].mxu1 }
 0x929   : > { %v4644_v42 = vadd.f32 %v1516_v39, %v4510_v1  ;;  %v2921_v43 = vpop.f32.mrb[27].mxu1  ;;  %v3205_v1 = vld [vmem:[%s718_s20 + $0x8] sm:$0xff]   ;;  %s4796_s20 = scalar_lea.hbm %s4988_s1, %s2787_s10 }
 0x92a   : > { %2933 = vmatpush3.bf16.msra.mxu1 %v3205_v1 }
 0x92b   : > { %v1522_v44 = vsel %vm890_vm1, %v4644_v42, 0.0  ;;  %2944 = vmatprep.subr.bf16.mxu1 %v3786_v9 }
 0x92c   : > { %1523 = vadd.xlane.f32.xlu0 %v1522_v44 }
 0x92d   : > { %2935 = vmatmul.mubr.msk.bf16.vlgmr.msra.gmra.mrb[28].mxu1 %vm890_vm1, %v1606_v52 }
 0x92e   : > { %2946 = vmatprep.mubr.msk.bf16.mxu1 %vm3787_vm2, %v3786_v9 }
 0x9b9   : > { %v1524_v45 = vpop.xlane.xlu0 %1523 }
 0x9ba   : > { %v1525_v46 = vmul.f32 0.03125, %v1524_v45 }
 0x9bc   : > { %v1526_v16 = vsub.f32 %v4644_v42, %v1525_v46 }
 0x9be   : > { %v1527_v47 = vmul.f32 %v1526_v16, %v1526_v16 }
 0x9c0   : > { %v1528_v48 = vsel %vm890_vm1, %v1527_v47, 0.0 }
 0x9c1   : > { %1529 = vadd.xlane.f32.xlu1 %v1528_v48 }
 0xa00   : > { %v1656_v4 = vpop.f32.mrb[28].mxu1 }
 0xa01   : > { %v2936_v5 = vpop.f32.mrb[29].mxu1 }
 0xa02   : > { %v1659_v6 = vpop.f32.mrb[30].mxu1 }
 0xa03   : > { %v1681_v7 = vpack.c.bf16 %v1659_v6, %v1656_v4  ;;  %v2937_v8 = vpop.f32.mrb[31].mxu1 }
 0xa05   : > { %1685 = vrot.lane.b32.xlu1 %v1681_v7, %s3790_s0  ;;  %1683 = vrot.lane.b32.xlu0 %v1681_v7, %s3789_s17  ;;  %v1701_v10 = vsel %vm1012_vm3, %v1681_v7, 0 }
 0xa09   : > { %1687 = vrot.lane.b32.xlu1 %v1681_v7, %s3788_s19 }
 0xa4e   : > { %v1530_v55 = vpop.xlane.xlu1 %1529 }
 0xa4f   : > { %v1531_v56 = vmul.f32 0.03125, %v1530_v55 }
 0xa51   : > { %v1532_v57 = vadd.f32 1e-05, %v1531_v56 }
 0xa53   : > { %3238 = vrsqrt.f32 %v1532_v57 }
 0xa5d   : > { %v3239_v61 = vpop.eup %3238 }
 0xa5e   : > { %v1534_v62 = vmul.f32 %v3239_v61, %v1526_v16 }
 0xa60   : > { %v1539_v0 = vmul.f32 %v1538_v60, %v1534_v62 }
 0xa62   : > { %v1544_v2 = vadd.f32 %v1543_v63, %v1539_v0 }
 0xa64   : > { %v1545_v3 = vpack.c.bf16 %v1544_v2, %v1544_v2 }
 0xa66   : > { %2927 = vmatmul.mubr.msk.bf16.vlgmr.msra.gmra.mrb[12].mxu0 %vm890_vm1, %v1545_v3 }
 0xa67   : > { %2940 = vmatprep.mubr.msk.bf16.mxu0 %vm3787_vm2, %v3786_v9  ;;  %2939 = vmatpush3.bf16.xpose.msra.mxu0 %v1701_v10 }
 0xa68   : > { %2950 = vmatprep.subr.bf16.mxu0 %v3786_v9 }
 0xa77   : > { %v1684_v11 = vpop.permute.xlu0 %1683  ;;  %v1686_v25 = vpop.permute.xlu1 %1685 }
 0xa78   : > { %v1747_v12 = vsel %vm1012_vm3, %v1684_v11, 0  ;;  %v1793_v26 = vsel %vm1012_vm3, %v1686_v25, 0 }
 0xa79   : > { %2945 = vmatpush3.bf16.xpose.msra.mxu1 %v1747_v12 }
 0xa7a   : > { %2956 = vmatprep.subr.bf16.mxu1 %v3786_v9 }
 0xa7b   : > { %v1688_v27 = vpop.permute.xlu1 %1687 }
 0xa7c   : > { %v1839_v29 = vsel %vm1012_vm3, %v1688_v27, 0 }
 0xb39   : > { %v1599_v14 = vpop.f32.mrb[12].mxu0 }
 0xb3a   : > { %v1600_v19 = vadd.f32 %v1599_v14, %v1549_v13  ;;  %v2928_v20 = vpop.f32.mrb[13].mxu0 }
 0xb3b   : > { %v1602_v21 = vpop.f32.mrb[14].mxu0 }
 0xb3c   : > { %v1605_v22 = vmul.f32 0.35355338, %v1600_v19  ;;  %v2929_v23 = vpop.f32.mrb[15].mxu0 }
 0xb3e   : > { %v1673_v24 = vpack.c.bf16 %v1605_v22, %v1605_v22 }
 0xb40   : > { %1679 = vrot.lane.b32.xlu1 %v1673_v24, %s3788_s19  ;;  %1675 = vrot.lane.b32.xlu0 %v1673_v24, %s3789_s17 }
 0xb41   : > { %2941 = vmatmul.mubr.msk.bf16.vlgmr.msra.gmra.mrb[16].mxu0 %vm1012_vm3, %v1673_v24 }
 0xb42   : > { %2951 = vmatpush3.bf16.xpose.msra.mxu0 %v1793_v26  ;;  %2952 = vmatprep.mubr.msk.bf16.mxu0 %vm3787_vm2, %v3786_v9 }
 0xb43   : > { %2962 = vmatprep.subr.bf16.mxu0 %v3786_v9 }
 0xb44   : > { %1677 = vrot.lane.b32.xlu0 %v1673_v24, %s3790_s0 }
 0xb48   : > { %1668 = vrot.lane.b32.xlu0 %v1666_v18, %s3796_s28 }
 0xbb2   : > { %v1676_v28 = vpop.permute.xlu0 %1675  ;;  %v1680_v31 = vpop.permute.xlu1 %1679 }
 0xbb3   : > { %2947 = vmatmul.mubr.msk.bf16.vlgmr.msra.gmra.mrb[32].mxu1 %vm1012_vm3, %v1676_v28 }
 0xbb4   : > { %2957 = vmatpush3.bf16.xpose.msra.mxu1 %v1839_v29  ;;  %2958 = vmatprep.mubr.msk.bf16.mxu1 %vm3787_vm2, %v3786_v9 }
 0xbb5   : > { %2968 = vmatprep.subr.bf16.mxu1 %v3786_v9 }
 0xbb6   : > { %v1678_v30 = vpop.permute.xlu0 %1677 }
 0xbb7   : > { %2953 = vmatmul.mubr.msk.bf16.vlgmr.msra.gmra.mrb[20].mxu0 %vm1012_vm3, %v1678_v30 }
 0xbb8   : > { %2964 = vmatprep.mubr.msk.bf16.mxu0 %vm3787_vm2, %v3786_v9 }
 0xbba   : > { %v1669_v32 = vpop.permute.xlu0 %1668 }
 0xbbb   : > { %v1671_v33 = vadd.f32 %v1669_v32, %v1656_v4  ;;  %v1672_v34 = vadd.f32 %v1669_v32, %v1659_v6  ;;  %2959 = vmatmul.mubr.msk.bf16.vlgmr.msra.gmra.mrb[36].mxu1 %vm1012_vm3, %v1680_v31 }
 0xbbc   : > { %2970 = vmatprep.mubr.msk.bf16.mxu1 %vm3787_vm2, %v3786_v9 }
 0xbbd   : > { %v1689_v35 = vpack.c.bf16 %v1672_v34, %v1671_v33 }
 0xc14   : > { %v1737_v37 = vpop.f32.mrb[16].mxu0 }
 0xc15   : > { %v2942_v38 = vpop.f32.mrb[17].mxu0  ;;  %v1881_v39 = vsel %vm1457_vm5, %v1737_v37, -inf }
 0xc16   : > { %1882 = vmax.xlane.f32.xlu1 %v1881_v39  ;;  %v1740_v40 = vpop.f32.mrb[18].mxu0 }
 0xc17   : > { %v2943_v41 = vpop.f32.mrb[19].mxu0 }
 0xc86   : > { %v1783_v43 = vpop.f32.mrb[32].mxu1 }
 0xc87   : > { %v2948_v44 = vpop.f32.mrb[33].mxu1  ;;  %v1884_v45 = vsel %vm1457_vm5, %v1783_v43, -inf }
 0xc88   : > { %1885 = vmax.xlane.f32.xlu0 %v1884_v45  ;;  %v1786_v46 = vpop.f32.mrb[34].mxu1 }
 0xc89   : > { %v2949_v16 = vpop.f32.mrb[35].mxu1 }
 0xc8a   : > { %v1829_v47 = vpop.f32.mrb[20].mxu0  ;;  %v3208_v16 = vld [vmem:[%s727_s21] sm:$0xff]  }
 0xc8b   : > { %v2954_v48 = vpop.f32.mrb[21].mxu0  ;;  %v1887_v49 = vsel %vm1457_vm5, %v1829_v47, -inf }
 0xc8c   : > { %v1832_v1 = vpop.f32.mrb[22].mxu0  ;;  %1888 = vmax.xlane.f32.xlu0 %v1887_v49 }
 0xc8d   : > { %v2955_v50 = vpop.f32.mrb[23].mxu0 }
 0xc8e   : > { %v1875_v51 = vpop.f32.mrb[36].mxu1 }
 0xc8f   : > { %v2960_v52 = vpop.f32.mrb[37].mxu1  ;;  %v1890_v53 = vsel %vm1457_vm5, %v1875_v51, -inf }
 0xc90   : > { %1891 = vmax.xlane.f32.xlu1 %v1890_v53  ;;  %v1878_v54 = vpop.f32.mrb[38].mxu1 }
 0xc91   : > { %v2961_v55 = vpop.f32.mrb[39].mxu1 }
 0xca1   : > { %1693 = vrot.lane.b32.xlu1 %v1689_v35, %s3790_s0 }
 0xca2   : > { %1691 = vrot.lane.b32.xlu0 %v1689_v35, %s3789_s17 }
 0xca3   : > { %v1883_v56 = vpop.xlane.xlu1 %1882 }
 0xca4   : > { %v1893_v57 = vsub.f32 %v1737_v37, %v1883_v56 }
 0xca5   : > { %1695 = vrot.lane.b32.xlu1 %v1689_v35, %s3788_s19 }
 0xca6   : > { %v1897_v58 = vmul.f32 1.442695, %v1893_v57 }
 0xca8   : > { %3240 = vpow2.f32 %v1897_v58 }
 0xca9   : > { %1929 = vrot.lane.b32.xlu1 %v1689_v35, %s3791_s4 }
 0xcb2   : > { %v3241_v60 = vpop.eup %3240 }
 0xcb3   : > { %v1905_v61 = vsel %vm1457_vm5, %v3241_v60, 0.0 }
 0xcc1   : > { %1906 = vadd.xlane.f32.xlu0 %v1905_v61 }
 0xd15   : > { %v1886_v62 = vpop.xlane.xlu0 %1885 }
 0xd16   : > { %v1894_v63 = vsub.f32 %v1783_v43, %v1886_v62 }
 0xd18   : > { %v1899_v0 = vmul.f32 1.442695, %v1894_v63 }
 0xd19   : > { %v1889_v2 = vpop.xlane.xlu0 %1888 }
 0xd1a   : > { %3242 = vpow2.f32 %v1899_v0  ;;  %v1895_v3 = vsub.f32 %v1829_v47, %v1889_v2  ;;  %v3209_v47 = vld [vmem:[%s727_s21 + $0x8] sm:$0xff]   ;;  %s2376_s21 = scalar_lea.sflag [#allocation4], %s4440_s30 }
 0xd1c   : > { %v1901_v4 = vmul.f32 1.442695, %v1895_v3 }
 0xd1d   : > { %v1892_v5 = vpop.xlane.xlu1 %1891  ;;  %v1692_v22 = vpop.permute.xlu0 %1691 }
 0xd1e   : > { %3244 = vpow2.f32 %v1901_v4  ;;  %v1896_v6 = vsub.f32 %v1875_v51, %v1892_v5  ;;  %v2132_v4 = vrot.slane %v4638_v36, %v1542_v59 }
 0xd20   : > { %v1903_v7 = vmul.f32 1.442695, %v1896_v6 }
 0xd21   : > { %v1694_v8 = vpop.permute.xlu1 %1693 }
 0xd22   : > { %3246 = vpow2.f32 %v1903_v7 }
 0xd24   : > { %v3243_v10 = vpop.eup %3242 }
 0xd25   : > { %v1696_v11 = vpop.permute.xlu1 %1695  ;;  %v1908_v12 = vsel %vm1457_vm5, %v3243_v10, 0.0 }
 0xd26   : > { %1909 = vadd.xlane.f32.xlu1 %v1908_v12 }
 0xd28   : > { %v3245_v13 = vpop.eup %3244 }
 0xd29   : > { %v1930_v14 = vpop.permute.xlu1 %1929  ;;  %v1911_v19 = vsel %vm1457_vm5, %v3245_v13, 0.0 }
 0xd2a   : > { %1912 = vadd.xlane.f32.xlu0 %v1911_v19  ;;  %2963 = vmatpush3.bf16.msra.mxu0 %v1930_v14 }
 0xd2b   : > { %2974 = vmatprep.subr.bf16.mxu0 %v3786_v9 }
 0xd2c   : > { %v3247_v20 = vpop.eup %3246 }
 0xd2d   : > { %v1914_v21 = vsel %vm1457_vm5, %v3247_v20, 0.0 }
 0xd2e   : > { %1915 = vadd.xlane.f32.xlu0 %v1914_v21  ;;  %v3210_v21 = vld [vmem:[%s736_s16] sm:$0xff]  }
 0xd37   : > { %2021 = vrot.lane.b32.xlu1 %v1694_v8, %s3791_s4 }
 0xd3b   : > { %2067 = vrot.lane.b32.xlu1 %v1696_v11, %s3791_s4 }
 0xd44   : > { %1975 = vrot.lane.b32.xlu0 %v1692_v22, %s3791_s4  ;;  %v3212_v22 = vld [vmem:[%s4496_s7] sm:$0xff]  }
 0xd4e   : > { %v1907_v23 = vpop.xlane.xlu0 %1906 }
 0xd4f   : > { %3248 = vrcp.f32 %v1907_v23  ;;  %v3213_v23 = vld [vmem:[%s4496_s7 + $0x8] sm:$0xff]  }
 0xd59   : > { %v3249_v24 = vpop.eup %3248 }
 0xd5a   : > { %v1921_v25 = vmul.f32 %v3249_v24, %v3241_v60  ;;  %v3214_v24 = vld [vmem:[%s4496_s7 + $0x10] sm:$0xff]  }
 0xd5c   : > { %v1925_v26 = vpack.c.bf16 %v1921_v25, %v1921_v25 }
 0xd5e   : > { %2965 = vmatmul.mubr.msk.bf16.vlgmr.msra.gmra.mrb[24].mxu0 %vm1457_vm5, %v1925_v26 }
 0xd5f   : > { %2976 = vmatprep.mubr.msk.bf16.mxu0 %vm3787_vm2, %v3786_v9 }
 0xdb3   : > { %v1910_v18 = vpop.xlane.xlu1 %1909 }
 0xdb4   : > { %3250 = vrcp.f32 %v1910_v18 }
 0xdb7   : > { %v1913_v27 = vpop.xlane.xlu0 %1912  ;;  %v2022_v28 = vpop.permute.xlu1 %2021 }
 0xdb8   : > { %3252 = vrcp.f32 %v1913_v27  ;;  %2975 = vmatpush3.bf16.msra.mxu0 %v2022_v28  ;;  %v2204_v27 = vsub.s32 4, %v4528_v15  ;;  %v2209_v28 = vsub.s32 5, %v4528_v15  ;;  %v3217_v15 = vld [vmem:[%s4496_s7 + $0x28] sm:$0xff]  }
 0xdb9   : > { %2986 = vmatprep.subr.bf16.mxu0 %v3786_v9 }
 0xdbb   : > { %v1916_v29 = vpop.xlane.xlu0 %1915  ;;  %v2068_v37 = vpop.permute.xlu1 %2067 }
 0xdbc   : > { %3254 = vrcp.f32 %v1916_v29  ;;  %v2205_v29 = vrot.slane %v4533_v17, %v2204_v27 }
 0xdbe   : > { %v3251_v30 = vpop.eup %3250 }
 0xdbf   : > { %v1922_v31 = vmul.f32 %v3251_v30, %v3243_v10  ;;  %v1976_v32 = vpop.permute.xlu0 %1975 }
 0xdc0   : > { %2969 = vmatpush3.bf16.msra.mxu1 %v1976_v32  ;;  %v2210_v32 = vrot.slane %v4533_v17, %v2209_v28  ;;  %v3218_v17 = vld [vmem:[%s4496_s7 + $0x30] sm:$0xff]  }
 0xdc1   : > { %v1926_v33 = vpack.c.bf16 %v1922_v31, %v1922_v31  ;;  %2980 = vmatprep.subr.bf16.mxu1 %v3786_v9 }
 0xdc2   : > { %v3253_v34 = vpop.eup %3252 }
 0xdc3   : > { %v1923_v35 = vmul.f32 %v3253_v34, %v3245_v13  ;;  %2971 = vmatmul.mubr.msk.bf16.vlgmr.msra.gmra.mrb[40].mxu1 %vm1457_vm5, %v1926_v33 }
 0xdc4   : > { %2981 = vmatpush3.bf16.msra.mxu1 %v2068_v37  ;;  %2982 = vmatprep.mubr.msk.bf16.mxu1 %vm3787_vm2, %v3786_v9  ;;  %v3215_v37 = vld [vmem:[%s4496_s7 + $0x18] sm:$0xff]  }
 0xdc5   : > { %v1927_v38 = vpack.c.bf16 %v1923_v35, %v1923_v35  ;;  %2994 = vmatprep.subr.bf16.mxu1 %v3786_v9 }
 0xdc6   : > { %v3255_v39 = vpop.eup %3254 }
 0xdc7   : > { %v1924_v40 = vmul.f32 %v3255_v39, %v3247_v20  ;;  %2977 = vmatmul.mubr.msk.bf16.vlgmr.msra.gmra.mrb[28].mxu0 %vm1457_vm5, %v1927_v38  ;;  %v3216_v38 = vld [vmem:[%s4496_s7 + $0x20] sm:$0xff]   ;;  %v3219_v39 = vld [vmem:[%s4496_s7 + $0x38] sm:$0xff]   ;;  %s3797_s7 = smov [#allocation22]  }
 0xdc8   : > { %2990 = vmatprep.mubr.msk.bf16.mxu0 %vm3787_vm2, %v3786_v9  ;;  %2987 = vmatpush3.bf16.msra.mxu0 %v3208_v16  ;;  %s3622_s19 = sshll.u32 %s3797_s7, 4  ;;  %s3623_s19 = int_to_ptr.vmem [resolvable:$false] %s3622_s19 }
 0xdc9   : > { %v1928_v41 = vpack.c.bf16 %v1924_v40, %v1924_v40  ;;  %2988 = vmatprep.subr.bf16.mxu0 %v3786_v9  ;;  %v2774_v40 = vld [vmem:[%s682_s18] ss:$0 sm:$0xff]  ;;  %s3624_s17 = scalar_lea.vmem %s3623_s19, 256  ;;  %p3625_p9 = scmp.lt.s32.totalorder %s4798_s15, %s3623_s19 }
 0xdcb   : > { %2983 = vmatmul.mubr.msk.bf16.vlgmr.msra.gmra.mrb[44].mxu1 %vm1457_vm5, %v1928_v41 }
 0xdcc   : > { %2998 = vmatprep.mubr.msk.bf16.mxu1 %vm3787_vm2, %v3786_v9  ;;  %2989 = vmatpush3.bf16.msra.mxu0 %v3209_v47 }
 0xdcd   : > { %3002 = vmatprep.subr.bf16.mxu0 %v3786_v9  ;;  %2995 = vmatpush3.bf16.msra.mxu1 %v3210_v21 }
 0xdce   : > { %2996 = vmatprep.subr.bf16.mxu1 %v3786_v9 }
 0xe31   : > { %v1969_v43 = vpop.f32.mrb[24].mxu0 }
 0xe32   : > { %v2966_v44 = vpop.f32.mrb[25].mxu0 }
 0xe33   : > { %v1972_v45 = vpop.f32.mrb[26].mxu0 }
 0xe34   : > { %v2967_v46 = vpop.f32.mrb[27].mxu0 }
 0xe96   : > { %v2015_v48 = vpop.f32.mrb[40].mxu1 }
 0xe97   : > { %2114 = vrot.lane.b32.xlu0 %v2015_v48, %s3793_s14  ;;  %v2972_v49 = vpop.f32.mrb[41].mxu1 }
 0xe98   : > { %v2018_v1 = vpop.f32.mrb[42].mxu1 }
 0xe99   : > { %v2973_v50 = vpop.f32.mrb[43].mxu1 }
 0xe9a   : > { %v2061_v51 = vpop.f32.mrb[28].mxu0  ;;  %v2372_v50 = vrot.slane %v4638_v36, %v2204_v27 }
 0xe9b   : > { %2118 = vrot.lane.b32.xlu1 %v2061_v51, %s3795_s27  ;;  %v2978_v52 = vpop.f32.mrb[29].mxu0 }
 0xe9c   : > { %v2064_v53 = vpop.f32.mrb[30].mxu0 }
 0xe9d   : > { %v2979_v54 = vpop.f32.mrb[31].mxu0 }
 0xe9e   : > { %v2107_v55 = vpop.f32.mrb[44].mxu1 }
 0xe9f   : > { %2122 = vrot.lane.b32.xlu0 %v2107_v55, %s3794_s22  ;;  %v2984_v56 = vpop.f32.mrb[45].mxu1 }
 0xea0   : > { %v2110_v57 = vpop.f32.mrb[46].mxu1 }
 0xea1   : > { %v2985_v58 = vpop.f32.mrb[47].mxu1 }
 0xf09   : > { %v2115_v60 = vpop.permute.xlu0 %2114 }
 0xf0a   : > { %v2125_v62 = vsel %vm1012_vm3, %v1969_v43, %v2115_v60 }
 0xf0d   : > { %v2119_v61 = vpop.permute.xlu1 %2118 }
 0xf0e   : > { %v2126_v63 = vsel %vm1457_vm5, %v2125_v62, %v2119_v61 }
 0xf11   : > { %v2123_v0 = vpop.permute.xlu0 %2122 }
 0xf12   : > { %v2127_v2 = vsel %vm1459_vm6, %v2126_v63, %v2123_v0 }
 0xf13   : > { %v2128_v3 = vpack.c.bf16 %v2127_v2, %v2127_v2 }
 0xf15   : > { %2991 = vmatmul.mubr.msk.bf16.vlgmr.msra.gmra.mrb[32].mxu0 %vm890_vm1, %v2128_v3 }
 0xf16   : > { %3018 = vmatprep.mubr.msk.bf16.mxu0 %vm3787_vm2, %v3786_v9  ;;  %3003 = vmatpush3.bf16.msra.mxu0 %v3212_v22 }
 0xf17   : > { %3004 = vmatprep.subr.bf16.mxu0 %v3786_v9 }
 0xf1a   : > { %3005 = vmatpush3.bf16.msra.mxu0 %v3213_v23 }
 0xf1b   : > { %3006 = vmatprep.subr.bf16.mxu0 %v3786_v9 }
 0xf1e   : > { %3007 = vmatpush3.bf16.msra.mxu0 %v3214_v24 }
 0xf1f   : > { %3008 = vmatprep.subr.bf16.mxu0 %v3786_v9 }
 0xf22   : > { %3009 = vmatpush3.bf16.msra.mxu0 %v3215_v37 }
 0xf23   : > { %3010 = vmatprep.subr.bf16.mxu0 %v3786_v9 }
 0xf26   : > { %3011 = vmatpush3.bf16.msra.mxu0 %v3216_v38 }
 0xf27   : > { %3012 = vmatprep.subr.bf16.mxu0 %v3786_v9 }
 0xf2a   : > { %3013 = vmatpush3.bf16.msra.mxu0 %v3217_v15 }
 0xf2b   : > { %3014 = vmatprep.subr.bf16.mxu0 %v3786_v9 }
 0xf2e   : > { %3015 = vmatpush3.bf16.msra.mxu0 %v3218_v17 }
 0xf2f   : > { %3016 = vmatprep.subr.bf16.mxu0 %v3786_v9 }
 0xf32   : > { %3017 = vmatpush3.bf16.msra.mxu0 %v3219_v39 }
 0xfe8   : > { %v2182_v5 = vpop.f32.mrb[32].mxu0 }
 0xfe9   : > { %v2183_v6 = vadd.f32 %v2182_v5, %v2132_v4  ;;  %v2992_v7 = vpop.f32.mrb[33].mxu0 }
 0xfea   : > { %v2185_v8 = vpop.f32.mrb[34].mxu0 }
 0xfeb   : > { %v4756_v10 = vadd.f32 %v2183_v6, %v4644_v42  ;;  %v2993_v11 = vpop.f32.mrb[35].mxu0  ;;  %v3211_v42 = vld [vmem:[%s736_s16 + $0x8] sm:$0xff]   ;;  %s3618_s16 = scalar_lea.vmem %s4798_s15, 128 }
 0xfec   : > { %2997 = vmatpush3.bf16.msra.mxu1 %v3211_v42  ;;  %p3619_p7 = scmp.ne.s32.totalorder %s4798_s15, %s3618_s16  ;;  %p3626_p10 = scmp.lt.s32.totalorder %s3624_s17, %s3618_s16 }
 0xfed   : > { %v2189_v12 = vsel %vm890_vm1, %v4756_v10, 0.0 }
 0xfee   : > { %2190 = vadd.xlane.f32.xlu1 %v2189_v12  ;;  %p3620_p4 = pnand %p3619_p7, %p4989_p12  ;;  %p3627_p2 = por %p3626_p10, %p3625_p9 }
 0xff0   : > { %p3621_p8 = pneg %p3620_p4 }
 0xff2   : > { %p3628_p1 = pnand %p3627_p2, %p3621_p8 }
0x107b   : > { %v2191_v13 = vpop.xlane.xlu1 %2190 }
0x107c   : > { %v2192_v14 = vmul.f32 0.03125, %v2191_v13 }
0x107e   : > { %v2193_v59 = vsub.f32 %v4756_v10, %v2192_v14 }
0x1080   : > { %v2194_v19 = vmul.f32 %v2193_v59, %v2193_v59 }
0x1082   : > { %v2195_v20 = vsel %vm890_vm1, %v2194_v19, 0.0 }
0x1083   : > { %2196 = vadd.xlane.f32.xlu0 %v2195_v20 }
0x1110   : > { %v2197_v25 = vpop.xlane.xlu0 %2196 }
0x1111   : > { %v2198_v26 = vmul.f32 0.03125, %v2197_v25 }
0x1113   : > { %v2199_v18 = vadd.f32 1e-05, %v2198_v26 }
0x1115   : > { %3256 = vrsqrt.f32 %v2199_v18 }
0x111f   : > { %v3257_v30 = vpop.eup %3256 }
0x1120   : > { %v2201_v31 = vmul.f32 %v3257_v30, %v2193_v59 }
0x1122   : > { %v2206_v33 = vmul.f32 %v2205_v29, %v2201_v31 }
0x1124   : > { %v2211_v34 = vadd.f32 %v2210_v32, %v2206_v33 }
0x1126   : > { %v2212_v35 = vpack.c.bf16 %v2211_v34, %v2211_v34 }
0x1128   : > { %2999 = vmatmul.mubr.msk.bf16.vlgmr.msra.gmra.mrb[48].mxu1 %vm890_vm1, %v2212_v35 }
0x11fb   : > { %v2268_v41 = vpop.f32.mrb[48].mxu1 }
0x11fc   : > { %v2269_v43 = vadd.f32 %v2774_v40, %v2268_v41  ;;  %v3000_v44 = vpop.f32.mrb[49].mxu1 }
0x11fd   : > { %v2271_v45 = vpop.f32.mrb[50].mxu1 }
0x11fe   : > { %v2275_v46 = vmul.f32 0.70710677, %v2269_v43  ;;  %v3001_v16 = vpop.f32.mrb[51].mxu1  ;;  %v2274_v48 = vmul.f32 0.5, %v2269_v43 }
0x1200   : > { %3258 = verf.f32 %v2275_v46 }
0x120a   : > { %v3259_v47 = vpop.eup %3258 }
0x120b   : > { %v2277_v49 = vadd.f32 1.0, %v3259_v47 }
0x120d   : > { %v2278_v1 = vmul.f32 %v2277_v49, %v2274_v48 }
0x120f   : > { %v2279_v9 = vpack.c.bf16 %v2278_v1, %v2278_v1 }
0x1211   : > { %3019 = vmatmul.mubr.bf16.vlgmr.msra.gmra.mrb[36].mxu0 %v2279_v9 }
0x12e4   : > { %v2362_v51 = vpop.f32.mrb[36].mxu0 }
0x12e5   : > { %v2368_v52 = vadd.f32 %v2362_v51, %v4756_v10  ;;  %v3020_v53 = vpop.f32.mrb[37].mxu0 }
0x12e6   : > { %v2365_v54 = vpop.f32.mrb[38].mxu0 }
0x12e7   : > { %v2373_v55 = vadd.f32 %v2372_v50, %v2368_v52  ;;  %v3021_v56 = vpop.f32.mrb[39].mxu0 }
0x12e9   : > { %2374 = vst.msk [vmem:[%s4504_s9] sm:$0xff] %vm890_vm1, %v2373_v55 }
0x12ea   : > { %3631 = shalt.err (!%p3628_p1)
}
0x12eb   : > { %s3632_s30 = scalar_lea.hbm %s4796_s20, 128  ;;  %s3636_s4 = scalar_lea.hbm %s4988_s1, 256 }
0x12ec   : > { %p3633_p5 = scmp.ne.s32.totalorder %s4796_s20, %s3632_s30  ;;  %p3637_p0 = scmp.lt.u32.totalorder %s4796_s20, %s4988_s1 }
0x12ed   : > { %p3638_p3 = scmp.lt.u32.totalorder %s3636_s4, %s3632_s30  ;;  %p3640_p7 = scmp.lt.u32.totalorder %s3632_s30, %s4796_s20 }
0x12ee   : > { %p3634_p11 = pnand %p3633_p5, %p4989_p12 }
0x12ef   : > { %p3639_p6 = por %p3638_p3, %p3637_p0 }
0x12f0   : > { %p3635_p13 = pneg %p3634_p11 }
0x12f1   : > { %p3641_p4 = por %p3640_p7, %p3639_p6 }
0x12f3   : > { %p3642_p8 = pnand %p3641_p4, %p3635_p13 }
0x12f5   : > { %3645 = shalt.err (!%p3642_p8)
}
0x12f6   : > { %3048 = dma.vmem_to_hbm [thread:$0]  (%p4989_p12), %s4798_s15, 128, %s4796_s20, %s2376_s21  }
0x12f7 PF: > { %s4990_s22 = sld [smem:[#allocation33_spill]]  ;;  %s4991_s27 = sld [smem:[#allocation40_spill]] }
0x12f8   : > { %p3095_p9 = scmp.ge.s32.totalorder %s3768_s13, 2 }
0x12fd   : > { %s2401_s28 = sand.u32 1, %s4990_s22   ;;  %p4992_p10 = scmp.ne.s32.totalorder %s4991_s27, 0 }
0x12fe   : > { %s2402_s24 = scalar_lea.sflag [#allocation4], %s2401_s28 }
0x12ff   : > { %p3089_p2 = pnand %p3095_p9, %p4992_p10 }
0x1301   : > { %3723 = dma.done.wait (!%p3089_p2), %s2402_s24, 128  }
0x1302   : > { %3725 = vsyncadd (!%p3089_p2), %s2402_s24, 4294967168  ;;  %s46_s13 = sadd.s32 1, %s3768_s13   ;;  %s4993_s21 = sld [smem:[#allocation32_spill]] }
0x1303   : > { %p43_p1 = scmp.ge.s32.totalorder %s46_s13, 6   ;;  %s4994_s3 = sld [smem:[#allocation44_spill]] }
0x1304   : > { %s4995_s28 = sld [smem:[#allocation36_spill]]  ;;  %s4996_s10 = sld [smem:[#allocation42_spill]] }
0x1305   : > { %s4997_s30 = sld [smem:[#allocation43_spill]]  ;;  %s4998_s22 = smov %s3736_s23 }
0x1306   : > { %s4999_s23 = smov %s4182_s2  ;;  %s5000_s24 = smov %s3744_s25 }
0x1307   : > { %s5001_s25 = smov %s3748_s26  ;;  %s5003_s27 = smov %s3760_s29 }
0x1308   :  { %45 = sbr.rel (!%p43_p1) target bundleno = 35 (0x23), region = 243 }
0x1309   : > { %s5002_s26 = smov %s4994_s3 }
0x130a   : > { %s5004_s29 = smov %s4996_s10 }
0x130f   :  { %2407 = vsyncpa [#allocation3], 1 }
0x1310   :  { %2409 = vsyncpa [#allocation3 + $0x1], 1 }
0x1311   :  { %2410 = vsyncpa [#allocation6], 1 }
0x1312   :  { %2412 = vsyncpa [#allocation6 + $0x1], 1 }
0x1313   :  { %2413 = vsyncpa [#allocation9], 1 }
0x1314   :  { %2415 = vsyncpa [#allocation9 + $0x1], 1 }
0x1315   :  { %2416 = vsyncpa [#allocation12], 1 }
0x1316   :  { %2418 = vsyncpa [#allocation12 + $0x1], 1 }
0x1317   :  { %2419 = vsyncpa [#allocation15], 1 }
0x1318   :  { %2421 = vsyncpa [#allocation15 + $0x1], 1 }
0x1319   :  { %2422 = vsyncpa [#allocation18], 1 }
0x131a   :  { %2424 = vsyncpa [#allocation18 + $0x1], 1 }
0x131b   :  { %2425 = vsyncpa [#allocation21], 1 }
0x131c   :  { %2427 = vsyncpa [#allocation21 + $0x1], 1 }
0x131d   :  { %2428 = vsyncpa [#allocation4], 1 }
0x131e   :  { %2430 = vsyncpa [#allocation4 + $0x1], 1 }

</bundles_post_ra>
